<compile_context>
chip_gen: v7x
topology: tpu7x:2x2x1
jax: 0.10.0
libtpu: 0.0.40
codegen_flags: <defaults>
</compile_context>

<pallas_src>
import numpy as np
import jax
import jax.numpy as jnp
from jax.experimental import pallas as pl
from jax.experimental.pallas import tpu as pltpu

EPS = 1e-5
APAD = 128   # 128-aligned flat halo at both ends of the padded scratch (>= Wp+1)


def make_basic_block_kernel(C, Mp, Wp, M):
    """Kernel for activations in padded flat layout (C, Mp = N*(H+2)*(W+2))."""

    def kernel(x_ref, w1_ref, w2_ref, g1_ref, b1_ref, g2_ref, b2_ref,
               mask_ref, out_ref, xf_ref, col_ref):
        # x_ref   : (C, Mp)   f32   zero-padded input (conv1 source + identity)
        # w*_ref  : (C, 9*C)  bf16  im2col weights: [co, (dh*3+dw)*C + ci]
        # g*/b*   : (C, 1)    f32   BN gamma / beta
        # mask_ref: (1, Mp)   f32   1.0 at interior (non-halo) positions
        # out_ref : (C, Mp)   f32
        # xf_ref  : (C, Mp + 2*APAD) bf16  padded activation scratch
        # col_ref : (9*C, Mp)        bf16  stacked im2col operand

        mask = mask_ref[...]
        inv_m = 1.0 / float(M)

        # Zero only the flat-end halo stripes once (stale VMEM may be NaN/Inf);
        # the interior is always overwritten before being read.
        xf_ref[:, :APAD] = jnp.zeros((C, APAD), jnp.bfloat16)
        xf_ref[:, APAD + Mp:] = jnp.zeros((C, APAD), jnp.bfloat16)

        def conv3x3(w_ref):
            # Stage the 9 static lane shifts of the padded scratch into the
            # stacked (9*C, Mp) operand, then contract K = 9*C in ONE MXU
            # matmul (bf16 x bf16 -> f32 accumulation).
            # NOTE: with C a multiple of 16 (bf16 sublane packing) these
            # sublane-offset stores are tile-aligned; at C=4 they are masked.
            t = 0
            for dh in range(3):
                for dw in range(3):
                    s = (dh - 1) * Wp + (dw - 1)
                    col_ref[t * C:(t + 1) * C, :] = \
                        xf_ref[:, APAD + s:APAD + s + Mp]
                    t += 1
            return jnp.dot(w_ref[...], col_ref[...],
                           preferred_element_type=jnp.float32)

        def bn_fused(acc, g_ref, b_ref):
            # Two-pass (centered) per-channel stats over the M interior
            # positions only; gamma/beta folded into one scale+bias FMA.
            am = acc * mask
            mean = jnp.sum(am, axis=1, keepdims=True) * inv_m
            d = am - mean * mask          # (acc - mean) at interior, 0 at halo
            var = jnp.sum(d * d, axis=1, keepdims=True) * inv_m
            scale = g_ref[...] * jax.lax.rsqrt(var + EPS)
            bias = b_ref[...] - mean * scale
            return acc * scale + bias

        # conv1 -> bn1 -> relu (the mask re-zeroes the image halo so conv2's
        # taps read exact zeros there -- load-bearing, do not remove).
        xf_ref[:, APAD:APAD + Mp] = x_ref[...].astype(jnp.bfloat16)
        y = jnp.maximum(bn_fused(conv3x3(w1_ref), g1_ref, b1_ref), 0.0) * mask

        # conv2 -> bn2 -> +identity -> relu  (halo columns of out are junk and
        # are sliced away in the wrapper).
        xf_ref[:, APAD:APAD + Mp] = y.astype(jnp.bfloat16)
        out = bn_fused(conv3x3(w2_ref), g2_ref, b2_ref) + x_ref[...]
        out_ref[...] = jnp.maximum(out, 0.0)

    return kernel


def basic_block_forward(x_nchw, w1, w2, g1, be1, g2, be2):
    """x_nchw: (N, C, H, W) float32; w1/w2: torch layout (Cout, Cin, 3, 3)."""
    N, C, H, W = x_nchw.shape
    planes = w1.shape[0]
    assert planes == C, "downsample=None requires inplanes == planes"
    Hp, Wp = H + 2, W + 2
    Mp = N * Hp * Wp
    M = N * H * W
    assert APAD >= Wp + 1, "flat halo must cover one padded-row tap shift"

    # Channel-leading padded flat layout (C, N*(H+2)*(W+2)); image halos = 0.
    x_pad = jnp.pad(x_nchw.astype(jnp.float32), ((0, 0), (0, 0), (1, 1), (1, 1)))
    x_flat = jnp.transpose(x_pad, (1, 0, 2, 3)).reshape(C, Mp)

    def flat_weights(w):
        # (Cout, Cin, 3, 3) -> (Cout, 3, 3, Cin) -> (Cout, 9*Cin), bf16.
        return jnp.transpose(w, (0, 2, 3, 1)).reshape(planes, 9 * planes) \
                  .astype(jnp.bfloat16)

    # Single (1, Mp) interior mask (replaces the old (9, M) per-tap masks).
    hp = np.arange(Hp)[:, None]
    wp = np.arange(Wp)[None, :]
    interior = (hp >= 1) & (hp <= H) & (wp >= 1) & (wp <= W)
    mask = jnp.asarray(np.broadcast_to(interior, (N, Hp, Wp))
                       .reshape(1, Mp).astype(np.float32))

    kernel = make_basic_block_kernel(C, Mp, Wp, M)

    out_flat = pl.pallas_call(
        kernel,
        out_shape=jax.ShapeDtypeStruct((planes, Mp), jnp.float32),
        in_specs=[pl.BlockSpec(memory_space=pltpu.MemorySpace.VMEM)] * 8,
        out_specs=pl.BlockSpec(memory_space=pltpu.MemorySpace.VMEM),
        scratch_shapes=[
            pltpu.VMEM((planes, Mp + 2 * APAD), jnp.bfloat16),   # padded acts
            pltpu.VMEM((9 * planes, Mp), jnp.bfloat16),          # im2col stack
        ],
        # 64 MiB scoped VMEM: plenty of headroom here; re-derive (<=~48 MiB)
        # when gridding at ResNet scale for v7x's 64 MiB physical VMEM.
        compiler_params=pltpu.CompilerParams(
            vmem_limit_bytes=64 * 1024 * 1024),
    )(x_flat, flat_weights(w1), flat_weights(w2),
      g1.reshape(planes, 1).astype(jnp.float32),
      be1.reshape(planes, 1).astype(jnp.float32),
      g2.reshape(planes, 1).astype(jnp.float32),
      be2.reshape(planes, 1).astype(jnp.float32),
      mask)

    out = out_flat.reshape(C, N, Hp, Wp)[:, :, 1:H + 1, 1:W + 1]
    return jnp.transpose(out, (1, 0, 2, 3))


def reference_forward(x, w1, w2, g1, be1, g2, be2):
    """Pure-JAX reference (NCHW), mirrors the PyTorch forward."""
    def conv(z, w):
        return jax.lax.conv_general_dilated(
            z, w, window_strides=(1, 1), padding=[(1, 1), (1, 1)],
            dimension_numbers=("NCHW", "OIHW", "NCHW"))

    def bn(y, g, b):
        mean = jnp.mean(y, axis=(0, 2, 3), keepdims=True)
        var = jnp.mean((y - mean) ** 2, axis=(0, 2, 3), keepdims=True)
        return (y - mean) / jnp.sqrt(var + EPS) * g.reshape(1, -1, 1, 1) \
            + b.reshape(1, -1, 1, 1)

    out = jnp.maximum(bn(conv(x, w1), g1, be1), 0.0)
    out = bn(conv(out, w2), g2, be2) + x
    return jnp.maximum(out, 0.0)


if __name__ == "__main__":
    N, C, H, W = 2, 4, 16, 16          # inplanes = planes = 4, stride = 1
    key = jax.random.PRNGKey(0)
    kx, kw1, kw2, kg1, kb1, kg2, kb2 = jax.random.split(key, 7)

    x = jax.random.normal(kx, (N, C, H, W), dtype=jnp.float32)
    w1 = 0.1 * jax.random.normal(kw1, (C, C, 3, 3), dtype=jnp.float32)
    w2 = 0.1 * jax.random.normal(kw2, (C, C, 3, 3), dtype=jnp.float32)
    g1 = 1.0 + 0.1 * jax.random.normal(kg1, (C,), dtype=jnp.float32)
    be1 = 0.1 * jax.random.normal(kb1, (C,), dtype=jnp.float32)
    g2 = 1.0 + 0.1 * jax.random.normal(kg2, (C,), dtype=jnp.float32)
    be2 = 0.1 * jax.random.normal(kb2, (C,), dtype=jnp.float32)

    out = basic_block_forward(x, w1, w2, g1, be1, g2, be2)
    out = jax.block_until_ready(out)

    ref = jax.block_until_ready(reference_forward(x, w1, w2, g1, be1, g2, be2))
    # bf16 matmul operands (f32 accumulation) -> relaxed tolerance vs f32 ref.
    np.testing.assert_allclose(np.asarray(out), np.asarray(ref),
                               rtol=5e-2, atol=5e-2)

    print("KERNEL_OK")
</pallas_src>

<mosaic_0001>
module attributes {stable_mosaic.version = 11 : i64} {
  func.func @kernel(%arg0: memref<4x648xf32, #tpu.memory_space<vmem>>, %arg1: memref<4x36xbf16, #tpu.memory_space<vmem>>, %arg2: memref<4x36xbf16, #tpu.memory_space<vmem>>, %arg3: memref<4x1xf32, #tpu.memory_space<vmem>>, %arg4: memref<4x1xf32, #tpu.memory_space<vmem>>, %arg5: memref<4x1xf32, #tpu.memory_space<vmem>>, %arg6: memref<4x1xf32, #tpu.memory_space<vmem>>, %arg7: memref<1x648xf32, #tpu.memory_space<vmem>>, %arg8: memref<4x648xf32, #tpu.memory_space<vmem>>, %arg9: memref<4x904xbf16, #tpu.memory_space<vmem>>, %arg10: memref<36x648xbf16, #tpu.memory_space<vmem>>) attributes {dimension_semantics = [], scalar_prefetch = 0 : i64, scratch_operands = 2 : i64, tpu.core_type = #tpu.core_type<tc>} {
    %c0 = arith.constant 0 : index
    %c0_0 = arith.constant 0 : index
    %0 = vector.load %arg7[%c0, %c0_0] : memref<1x648xf32, #tpu.memory_space<vmem>>, vector<1x648xf32>
    %cst = arith.constant 0.000000e+00 : bf16
    %1 = vector.broadcast %cst : bf16 to vector<4x128xbf16>
    %c0_1 = arith.constant 0 : index
    %c0_2 = arith.constant 0 : index
    %2 = vector.load %arg9[%c0_1, %c0_2] : memref<4x904xbf16, #tpu.memory_space<vmem>>, vector<4x128xbf16>
    tpu.vector_store %arg9[%c0_1, %c0_2], %1 {strides = array<i32>} : memref<4x904xbf16, #tpu.memory_space<vmem>>, vector<4x128xbf16>,
    %cst_3 = arith.constant 0.000000e+00 : bf16
    %3 = vector.broadcast %cst_3 : bf16 to vector<4x128xbf16>
    %c0_4 = arith.constant 0 : index
    %c776 = arith.constant 776 : index
    %4 = vector.load %arg9[%c0_4, %c776] : memref<4x904xbf16, #tpu.memory_space<vmem>>, vector<4x128xbf16>
    tpu.vector_store %arg9[%c0_4, %c776], %3 {strides = array<i32>} : memref<4x904xbf16, #tpu.memory_space<vmem>>, vector<4x128xbf16>,
    %c0_5 = arith.constant 0 : index
    %c0_6 = arith.constant 0 : index
    %5 = vector.load %arg0[%c0_5, %c0_6] : memref<4x648xf32, #tpu.memory_space<vmem>>, vector<4x648xf32>
    %6 = arith.truncf %5 : vector<4x648xf32> to vector<4x648xbf16>
    %c0_7 = arith.constant 0 : index
    %c128 = arith.constant 128 : index
    %7 = vector.load %arg9[%c0_7, %c128] : memref<4x904xbf16, #tpu.memory_space<vmem>>, vector<4x648xbf16>
    tpu.vector_store %arg9[%c0_7, %c128], %6 {strides = array<i32>} : memref<4x904xbf16, #tpu.memory_space<vmem>>, vector<4x648xbf16>,
    %c0_8 = arith.constant 0 : index
    %c109 = arith.constant 109 : index
    %8 = vector.load %arg9[%c0_8, %c109] : memref<4x904xbf16, #tpu.memory_space<vmem>>, vector<4x648xbf16>
    %c0_9 = arith.constant 0 : index
    %c0_10 = arith.constant 0 : index
    %9 = vector.load %arg10[%c0_9, %c0_10] : memref<36x648xbf16, #tpu.memory_space<vmem>>, vector<4x648xbf16>
    tpu.vector_store %arg10[%c0_9, %c0_10], %8 {strides = array<i32>} : memref<36x648xbf16, #tpu.memory_space<vmem>>, vector<4x648xbf16>,
    %c0_11 = arith.constant 0 : index
    %c110 = arith.constant 110 : index
    %10 = vector.load %arg9[%c0_11, %c110] : memref<4x904xbf16, #tpu.memory_space<vmem>>, vector<4x648xbf16>
    %c4 = arith.constant 4 : index
    %c0_12 = arith.constant 0 : index
    %11 = vector.load %arg10[%c4, %c0_12] : memref<36x648xbf16, #tpu.memory_space<vmem>>, vector<4x648xbf16>
    tpu.vector_store %arg10[%c4, %c0_12], %10 {strides = array<i32>} : memref<36x648xbf16, #tpu.memory_space<vmem>>, vector<4x648xbf16>,
    %c0_13 = arith.constant 0 : index
    %c111 = arith.constant 111 : index
    %12 = vector.load %arg9[%c0_13, %c111] : memref<4x904xbf16, #tpu.memory_space<vmem>>, vector<4x648xbf16>
    %c8 = arith.constant 8 : index
    %c0_14 = arith.constant 0 : index
    %13 = vector.load %arg10[%c8, %c0_14] : memref<36x648xbf16, #tpu.memory_space<vmem>>, vector<4x648xbf16>
    tpu.vector_store %arg10[%c8, %c0_14], %12 {strides = array<i32>} : memref<36x648xbf16, #tpu.memory_space<vmem>>, vector<4x648xbf16>,
    %c0_15 = arith.constant 0 : index
    %c127 = arith.constant 127 : index
    %14 = vector.load %arg9[%c0_15, %c127] : memref<4x904xbf16, #tpu.memory_space<vmem>>, vector<4x648xbf16>
    %c12 = arith.constant 12 : index
    %c0_16 = arith.constant 0 : index
    %15 = vector.load %arg10[%c12, %c0_16] : memref<36x648xbf16, #tpu.memory_space<vmem>>, vector<4x648xbf16>
    tpu.vector_store %arg10[%c12, %c0_16], %14 {strides = array<i32>} : memref<36x648xbf16, #tpu.memory_space<vmem>>, vector<4x648xbf16>,
    %c0_17 = arith.constant 0 : index
    %c128_18 = arith.constant 128 : index
    %16 = vector.load %arg9[%c0_17, %c128_18] : memref<4x904xbf16, #tpu.memory_space<vmem>>, vector<4x648xbf16>
    %c16 = arith.constant 16 : index
    %c0_19 = arith.constant 0 : index
    %17 = vector.load %arg10[%c16, %c0_19] : memref<36x648xbf16, #tpu.memory_space<vmem>>, vector<4x648xbf16>
    tpu.vector_store %arg10[%c16, %c0_19], %16 {strides = array<i32>} : memref<36x648xbf16, #tpu.memory_space<vmem>>, vector<4x648xbf16>,
    %c0_20 = arith.constant 0 : index
    %c129 = arith.constant 129 : index
    %18 = vector.load %arg9[%c0_20, %c129] : memref<4x904xbf16, #tpu.memory_space<vmem>>, vector<4x648xbf16>
    %c20 = arith.constant 20 : index
    %c0_21 = arith.constant 0 : index
    %19 = vector.load %arg10[%c20, %c0_21] : memref<36x648xbf16, #tpu.memory_space<vmem>>, vector<4x648xbf16>
    tpu.vector_store %arg10[%c20, %c0_21], %18 {strides = array<i32>} : memref<36x648xbf16, #tpu.memory_space<vmem>>, vector<4x648xbf16>,
    %c0_22 = arith.constant 0 : index
    %c145 = arith.constant 145 : index
    %20 = vector.load %arg9[%c0_22, %c145] : memref<4x904xbf16, #tpu.memory_space<vmem>>, vector<4x648xbf16>
    %c24 = arith.constant 24 : index
    %c0_23 = arith.constant 0 : index
    %21 = vector.load %arg10[%c24, %c0_23] : memref<36x648xbf16, #tpu.memory_space<vmem>>, vector<4x648xbf16>
    tpu.vector_store %arg10[%c24, %c0_23], %20 {strides = array<i32>} : memref<36x648xbf16, #tpu.memory_space<vmem>>, vector<4x648xbf16>,
    %c0_24 = arith.constant 0 : index
    %c146 = arith.constant 146 : index
    %22 = vector.load %arg9[%c0_24, %c146] : memref<4x904xbf16, #tpu.memory_space<vmem>>, vector<4x648xbf16>
    %c28 = arith.constant 28 : index
    %c0_25 = arith.constant 0 : index
    %23 = vector.load %arg10[%c28, %c0_25] : memref<36x648xbf16, #tpu.memory_space<vmem>>, vector<4x648xbf16>
    tpu.vector_store %arg10[%c28, %c0_25], %22 {strides = array<i32>} : memref<36x648xbf16, #tpu.memory_space<vmem>>, vector<4x648xbf16>,
    %c0_26 = arith.constant 0 : index
    %c147 = arith.constant 147 : index
    %24 = vector.load %arg9[%c0_26, %c147] : memref<4x904xbf16, #tpu.memory_space<vmem>>, vector<4x648xbf16>
    %c32 = arith.constant 32 : index
    %c0_27 = arith.constant 0 : index
    %25 = vector.load %arg10[%c32, %c0_27] : memref<36x648xbf16, #tpu.memory_space<vmem>>, vector<4x648xbf16>
    tpu.vector_store %arg10[%c32, %c0_27], %24 {strides = array<i32>} : memref<36x648xbf16, #tpu.memory_space<vmem>>, vector<4x648xbf16>,
    %c0_28 = arith.constant 0 : index
    %c0_29 = arith.constant 0 : index
    %26 = vector.load %arg1[%c0_28, %c0_29] : memref<4x36xbf16, #tpu.memory_space<vmem>>, vector<4x36xbf16>
    %c0_30 = arith.constant 0 : index
    %c0_31 = arith.constant 0 : index
    %27 = vector.load %arg10[%c0_30, %c0_31] : memref<36x648xbf16, #tpu.memory_space<vmem>>, vector<36x648xbf16>
    %cst_32 = arith.constant dense<0.000000e+00> : vector<4x648xf32>
    %28 = tpu.matmul %26, %27, %cst_32 {dimension_numbers = #tpu.dot_dimension_numbers<[1], [0], [0], [1], [0, 0, 1, 1], [], []>} : vector<4x36xbf16>, vector<36x648xbf16>, vector<4x648xf32> -> vector<4x648xf32>
    %29 = vector.broadcast %0 : vector<1x648xf32> to vector<4x648xf32>
    %30 = arith.mulf %28, %29 : vector<4x648xf32>
    %cst_33 = arith.constant dense<0.000000e+00> : vector<4xf32>
    %31 = vector.multi_reduction <add>, %30, %cst_33 [1] : vector<4x648xf32> to vector<4xf32>
    %32 = vector.shape_cast %31 : vector<4xf32> to vector<4x1xf32>
    %cst_34 = arith.constant 0.001953125 : f32
    %33 = vector.broadcast %cst_34 : f32 to vector<4x1xf32>
    %34 = arith.mulf %32, %33 : vector<4x1xf32>
    %35 = vector.broadcast %34 : vector<4x1xf32> to vector<4x648xf32>
    %36 = vector.broadcast %0 : vector<1x648xf32> to vector<4x648xf32>
    %37 = arith.mulf %35, %36 : vector<4x648xf32>
    %38 = arith.subf %30, %37 : vector<4x648xf32>
    %39 = arith.mulf %38, %38 : vector<4x648xf32>
    %cst_35 = arith.constant dense<0.000000e+00> : vector<4xf32>
    %40 = vector.multi_reduction <add>, %39, %cst_35 [1] : vector<4x648xf32> to vector<4xf32>
    %41 = vector.shape_cast %40 : vector<4xf32> to vector<4x1xf32>
    %cst_36 = arith.constant 0.001953125 : f32
    %42 = vector.broadcast %cst_36 : f32 to vector<4x1xf32>
    %43 = arith.mulf %41, %42 : vector<4x1xf32>
    %c0_37 = arith.constant 0 : index
    %c0_38 = arith.constant 0 : index
    %44 = vector.load %arg3[%c0_37, %c0_38] : memref<4x1xf32, #tpu.memory_space<vmem>>, vector<4x1xf32>
    %cst_39 = arith.constant 9.99999974E-6 : f32
    %45 = vector.broadcast %cst_39 : f32 to vector<4x1xf32>
    %46 = arith.addf %43, %45 : vector<4x1xf32>
    %47 = math.rsqrt %46 : vector<4x1xf32>
    %48 = arith.mulf %44, %47 : vector<4x1xf32>
    %c0_40 = arith.constant 0 : index
    %c0_41 = arith.constant 0 : index
    %49 = vector.load %arg4[%c0_40, %c0_41] : memref<4x1xf32, #tpu.memory_space<vmem>>, vector<4x1xf32>
    %50 = arith.mulf %34, %48 : vector<4x1xf32>
    %51 = arith.subf %49, %50 : vector<4x1xf32>
    %52 = vector.broadcast %48 : vector<4x1xf32> to vector<4x648xf32>
    %53 = arith.mulf %28, %52 : vector<4x648xf32>
    %54 = vector.broadcast %51 : vector<4x1xf32> to vector<4x648xf32>
    %55 = arith.addf %53, %54 : vector<4x648xf32>
    %cst_42 = arith.constant 0.000000e+00 : f32
    %56 = vector.broadcast %cst_42 : f32 to vector<4x648xf32>
    %57 = arith.maximumf %55, %56 : vector<4x648xf32>
    %58 = vector.broadcast %0 : vector<1x648xf32> to vector<4x648xf32>
    %59 = arith.mulf %57, %58 : vector<4x648xf32>
    %60 = arith.truncf %59 : vector<4x648xf32> to vector<4x648xbf16>
    %c0_43 = arith.constant 0 : index
    %c128_44 = arith.constant 128 : index
    %61 = vector.load %arg9[%c0_43, %c128_44] : memref<4x904xbf16, #tpu.memory_space<vmem>>, vector<4x648xbf16>
    tpu.vector_store %arg9[%c0_43, %c128_44], %60 {strides = array<i32>} : memref<4x904xbf16, #tpu.memory_space<vmem>>, vector<4x648xbf16>,
    %c0_45 = arith.constant 0 : index
    %c109_46 = arith.constant 109 : index
    %62 = vector.load %arg9[%c0_45, %c109_46] : memref<4x904xbf16, #tpu.memory_space<vmem>>, vector<4x648xbf16>
    %c0_47 = arith.constant 0 : index
    %c0_48 = arith.constant 0 : index
    %63 = vector.load %arg10[%c0_47, %c0_48] : memref<36x648xbf16, #tpu.memory_space<vmem>>, vector<4x648xbf16>
    tpu.vector_store %arg10[%c0_47, %c0_48], %62 {strides = array<i32>} : memref<36x648xbf16, #tpu.memory_space<vmem>>, vector<4x648xbf16>,
    %c0_49 = arith.constant 0 : index
    %c110_50 = arith.constant 110 : index
    %64 = vector.load %arg9[%c0_49, %c110_50] : memref<4x904xbf16, #tpu.memory_space<vmem>>, vector<4x648xbf16>
    %c4_51 = arith.constant 4 : index
    %c0_52 = arith.constant 0 : index
    %65 = vector.load %arg10[%c4_51, %c0_52] : memref<36x648xbf16, #tpu.memory_space<vmem>>, vector<4x648xbf16>
    tpu.vector_store %arg10[%c4_51, %c0_52], %64 {strides = array<i32>} : memref<36x648xbf16, #tpu.memory_space<vmem>>, vector<4x648xbf16>,
    %c0_53 = arith.constant 0 : index
    %c111_54 = arith.constant 111 : index
    %66 = vector.load %arg9[%c0_53, %c111_54] : memref<4x904xbf16, #tpu.memory_space<vmem>>, vector<4x648xbf16>
    %c8_55 = arith.constant 8 : index
    %c0_56 = arith.constant 0 : index
    %67 = vector.load %arg10[%c8_55, %c0_56] : memref<36x648xbf16, #tpu.memory_space<vmem>>, vector<4x648xbf16>
    tpu.vector_store %arg10[%c8_55, %c0_56], %66 {strides = array<i32>} : memref<36x648xbf16, #tpu.memory_space<vmem>>, vector<4x648xbf16>,
    %c0_57 = arith.constant 0 : index
    %c127_58 = arith.constant 127 : index
    %68 = vector.load %arg9[%c0_57, %c127_58] : memref<4x904xbf16, #tpu.memory_space<vmem>>, vector<4x648xbf16>
    %c12_59 = arith.constant 12 : index
    %c0_60 = arith.constant 0 : index
    %69 = vector.load %arg10[%c12_59, %c0_60] : memref<36x648xbf16, #tpu.memory_space<vmem>>, vector<4x648xbf16>
    tpu.vector_store %arg10[%c12_59, %c0_60], %68 {strides = array<i32>} : memref<36x648xbf16, #tpu.memory_space<vmem>>, vector<4x648xbf16>,
    %c0_61 = arith.constant 0 : index
    %c128_62 = arith.constant 128 : index
    %70 = vector.load %arg9[%c0_61, %c128_62] : memref<4x904xbf16, #tpu.memory_space<vmem>>, vector<4x648xbf16>
    %c16_63 = arith.constant 16 : index
    %c0_64 = arith.constant 0 : index
    %71 = vector.load %arg10[%c16_63, %c0_64] : memref<36x648xbf16, #tpu.memory_space<vmem>>, vector<4x648xbf16>
    tpu.vector_store %arg10[%c16_63, %c0_64], %70 {strides = array<i32>} : memref<36x648xbf16, #tpu.memory_space<vmem>>, vector<4x648xbf16>,
    %c0_65 = arith.constant 0 : index
    %c129_66 = arith.constant 129 : index
    %72 = vector.load %arg9[%c0_65, %c129_66] : memref<4x904xbf16, #tpu.memory_space<vmem>>, vector<4x648xbf16>
    %c20_67 = arith.constant 20 : index
    %c0_68 = arith.constant 0 : index
    %73 = vector.load %arg10[%c20_67, %c0_68] : memref<36x648xbf16, #tpu.memory_space<vmem>>, vector<4x648xbf16>
    tpu.vector_store %arg10[%c20_67, %c0_68], %72 {strides = array<i32>} : memref<36x648xbf16, #tpu.memory_space<vmem>>, vector<4x648xbf16>,
    %c0_69 = arith.constant 0 : index
    %c145_70 = arith.constant 145 : index
    %74 = vector.load %arg9[%c0_69, %c145_70] : memref<4x904xbf16, #tpu.memory_space<vmem>>, vector<4x648xbf16>
    %c24_71 = arith.constant 24 : index
    %c0_72 = arith.constant 0 : index
    %75 = vector.load %arg10[%c24_71, %c0_72] : memref<36x648xbf16, #tpu.memory_space<vmem>>, vector<4x648xbf16>
    tpu.vector_store %arg10[%c24_71, %c0_72], %74 {strides = array<i32>} : memref<36x648xbf16, #tpu.memory_space<vmem>>, vector<4x648xbf16>,
    %c0_73 = arith.constant 0 : index
    %c146_74 = arith.constant 146 : index
    %76 = vector.load %arg9[%c0_73, %c146_74] : memref<4x904xbf16, #tpu.memory_space<vmem>>, vector<4x648xbf16>
    %c28_75 = arith.constant 28 : index
    %c0_76 = arith.constant 0 : index
    %77 = vector.load %arg10[%c28_75, %c0_76] : memref<36x648xbf16, #tpu.memory_space<vmem>>, vector<4x648xbf16>
    tpu.vector_store %arg10[%c28_75, %c0_76], %76 {strides = array<i32>} : memref<36x648xbf16, #tpu.memory_space<vmem>>, vector<4x648xbf16>,
    %c0_77 = arith.constant 0 : index
    %c147_78 = arith.constant 147 : index
    %78 = vector.load %arg9[%c0_77, %c147_78] : memref<4x904xbf16, #tpu.memory_space<vmem>>, vector<4x648xbf16>
    %c32_79 = arith.constant 32 : index
    %c0_80 = arith.constant 0 : index
    %79 = vector.load %arg10[%c32_79, %c0_80] : memref<36x648xbf16, #tpu.memory_space<vmem>>, vector<4x648xbf16>
    tpu.vector_store %arg10[%c32_79, %c0_80], %78 {strides = array<i32>} : memref<36x648xbf16, #tpu.memory_space<vmem>>, vector<4x648xbf16>,
    %c0_81 = arith.constant 0 : index
    %c0_82 = arith.constant 0 : index
    %80 = vector.load %arg2[%c0_81, %c0_82] : memref<4x36xbf16, #tpu.memory_space<vmem>>, vector<4x36xbf16>
    %c0_83 = arith.constant 0 : index
    %c0_84 = arith.constant 0 : index
    %81 = vector.load %arg10[%c0_83, %c0_84] : memref<36x648xbf16, #tpu.memory_space<vmem>>, vector<36x648xbf16>
    %cst_85 = arith.constant dense<0.000000e+00> : vector<4x648xf32>
    %82 = tpu.matmul %80, %81, %cst_85 {dimension_numbers = #tpu.dot_dimension_numbers<[1], [0], [0], [1], [0, 0, 1, 1], [], []>} : vector<4x36xbf16>, vector<36x648xbf16>, vector<4x648xf32> -> vector<4x648xf32>
    %83 = vector.broadcast %0 : vector<1x648xf32> to vector<4x648xf32>
    %84 = arith.mulf %82, %83 : vector<4x648xf32>
    %cst_86 = arith.constant dense<0.000000e+00> : vector<4xf32>
    %85 = vector.multi_reduction <add>, %84, %cst_86 [1] : vector<4x648xf32> to vector<4xf32>
    %86 = vector.shape_cast %85 : vector<4xf32> to vector<4x1xf32>
    %cst_87 = arith.constant 0.001953125 : f32
    %87 = vector.broadcast %cst_87 : f32 to vector<4x1xf32>
    %88 = arith.mulf %86, %87 : vector<4x1xf32>
    %89 = vector.broadcast %88 : vector<4x1xf32> to vector<4x648xf32>
    %90 = vector.broadcast %0 : vector<1x648xf32> to vector<4x648xf32>
    %91 = arith.mulf %89, %90 : vector<4x648xf32>
    %92 = arith.subf %84, %91 : vector<4x648xf32>
    %93 = arith.mulf %92, %92 : vector<4x648xf32>
    %cst_88 = arith.constant dense<0.000000e+00> : vector<4xf32>
    %94 = vector.multi_reduction <add>, %93, %cst_88 [1] : vector<4x648xf32> to vector<4xf32>
    %95 = vector.shape_cast %94 : vector<4xf32> to vector<4x1xf32>
    %cst_89 = arith.constant 0.001953125 : f32
    %96 = vector.broadcast %cst_89 : f32 to vector<4x1xf32>
    %97 = arith.mulf %95, %96 : vector<4x1xf32>
    %c0_90 = arith.constant 0 : index
    %c0_91 = arith.constant 0 : index
    %98 = vector.load %arg5[%c0_90, %c0_91] : memref<4x1xf32, #tpu.memory_space<vmem>>, vector<4x1xf32>
    %cst_92 = arith.constant 9.99999974E-6 : f32
    %99 = vector.broadcast %cst_92 : f32 to vector<4x1xf32>
    %100 = arith.addf %97, %99 : vector<4x1xf32>
    %101 = math.rsqrt %100 : vector<4x1xf32>
    %102 = arith.mulf %98, %101 : vector<4x1xf32>
    %c0_93 = arith.constant 0 : index
    %c0_94 = arith.constant 0 : index
    %103 = vector.load %arg6[%c0_93, %c0_94] : memref<4x1xf32, #tpu.memory_space<vmem>>, vector<4x1xf32>
    %104 = arith.mulf %88, %102 : vector<4x1xf32>
    %105 = arith.subf %103, %104 : vector<4x1xf32>
    %106 = vector.broadcast %102 : vector<4x1xf32> to vector<4x648xf32>
    %107 = arith.mulf %82, %106 : vector<4x648xf32>
    %108 = vector.broadcast %105 : vector<4x1xf32> to vector<4x648xf32>
    %109 = arith.addf %107, %108 : vector<4x648xf32>
    %c0_95 = arith.constant 0 : index
    %c0_96 = arith.constant 0 : index
    %110 = vector.load %arg0[%c0_95, %c0_96] : memref<4x648xf32, #tpu.memory_space<vmem>>, vector<4x648xf32>
    %111 = arith.addf %109, %110 : vector<4x648xf32>
    %cst_97 = arith.constant 0.000000e+00 : f32
    %112 = vector.broadcast %cst_97 : f32 to vector<4x648xf32>
    %113 = arith.maximumf %111, %112 : vector<4x648xf32>
    %c0_98 = arith.constant 0 : index
    %c0_99 = arith.constant 0 : index
    %114 = vector.load %arg8[%c0_98, %c0_99] : memref<4x648xf32, #tpu.memory_space<vmem>>, vector<4x648xf32>
    tpu.vector_store %arg8[%c0_98, %c0_99], %113 {strides = array<i32>} : memref<4x648xf32, #tpu.memory_space<vmem>>, vector<4x648xf32>,
    return
  }
}

</mosaic_0001>

<bundles_post_ra>
// kernel: tpu_custom_call.1
= control target key start
LH: loop header
LB: loop body
LE: loop exit
PB: predicated region body
PF: predicated region fallthrough
CT: control target
= control target key end

     0   :  { %13 = vsyncpa [#allocation5], 0  ;;  %s2810_s0 = inlined_call_operand.hbm [shape: f32[4,648], index: 0, kind: input, shape index: {}]   ;;  %s2811_s1 = inlined_call_operand.hbm [shape: bf16[4,36], index: 1, kind: input, shape index: {}]   ;;  %s2812_s2 = inlined_call_operand.hbm [shape: bf16[4,36], index: 2, kind: input, shape index: {}]   ;;  %s2813_s3 = inlined_call_operand.hbm [shape: f32[4,1], index: 3, kind: input, shape index: {}]   ;;  %s2814_s4 = inlined_call_operand.hbm [shape: f32[4,1], index: 4, kind: input, shape index: {}]   ;;  %s2815_s5 = inlined_call_operand.hbm [shape: f32[4,1], index: 5, kind: input, shape index: {}]   ;;  %s2816_s6 = inlined_call_operand.hbm [shape: f32[4,1], index: 6, kind: input, shape index: {}]   ;;  %s2817_s7 = inlined_call_operand.hbm [shape: f32[1,648], index: 7, kind: input, shape index: {}]   ;;  %s2818_s8 = inlined_call_operand.hbm [shape: f32[4,648], index: 8, kind: output, shape index: {}]  }
   0x1   :  { %14 = vsyncpa [#allocation8], 0 }
   0x2   :  { %15 = vsyncpa [#allocation11], 0 }
   0x3   :  { %16 = vsyncpa [#allocation14], 0 }
   0x4   :  { %17 = vsyncpa [#allocation17], 0 }
   0x5   :  { %18 = vsyncpa [#allocation6], 0  ;;  %s2180_s27 = smov [#allocation7]   ;;  %s2181_s29 = smov [#allocation10]  }
   0x6   :  { %s35_s28 = sshll.u32 %s2180_s27, 4  ;;  %s55_s30 = sshll.u32 %s2181_s29, 4  ;;  %s36_s28 = int_to_ptr.vmem [resolvable:$true] %s35_s28  ;;  %s56_s30 = int_to_ptr.vmem [resolvable:$true] %s55_s30 }
   0x7   :  { %s1970_s11 = scalar_lea.hbm %s2811_s1, 32 }
   0x8   :  { %p1971_p0 = scmp.ne.s32.totalorder %s2811_s1, %s1970_s11  ;;  %p1974_p1 = scmp.lt.u32.totalorder %s1970_s11, %s2811_s1 }
   0xa   :  { %p1976_p2 = pnand %p1974_p1, %p1971_p0 }
   0xc   :  { %1979 = shalt.err (!%p1976_p2)
}
   0xd   :  { %s1980_s16 = scalar_lea.vmem %s36_s28, 32  ;;  %p1985_p4 = scmp.lt.s32.totalorder %s36_s28, %s36_s28 }
   0xe   :  { %p1981_p3 = scmp.ne.s32.totalorder %s36_s28, %s1980_s16  ;;  %p1986_p5 = scmp.lt.s32.totalorder %s1980_s16, %s1980_s16 }
  0x10   :  { %p1987_p6 = por %p1986_p5, %p1985_p4 }
  0x12   :  { %p1988_p7 = pnand %p1987_p6, %p1981_p3 }
  0x14   :  { %1991 = shalt.err (!%p1988_p7)
}
  0x15   :  { %38 = dma.hbm_to_vmem [thread:$0]  %s2811_s1, 32, %s36_s28, [#allocation8]  }
  0x16   :  { %s1992_s21 = scalar_lea.hbm %s2813_s3, 64 }
  0x17   :  { %p1993_p8 = scmp.ne.s32.totalorder %s2813_s3, %s1992_s21  ;;  %p1996_p9 = scmp.lt.u32.totalorder %s1992_s21, %s2813_s3 }
  0x19   :  { %p1998_p10 = pnand %p1996_p9, %p1993_p8 }
  0x1b   :  { %2001 = shalt.err (!%p1998_p10)
}
  0x1c   :  { %s2002_s26 = scalar_lea.vmem %s56_s30, 64  ;;  %p2007_p12 = scmp.lt.s32.totalorder %s56_s30, %s56_s30 }
  0x1d   :  { %p2003_p11 = scmp.ne.s32.totalorder %s56_s30, %s2002_s26  ;;  %p2008_p13 = scmp.lt.s32.totalorder %s2002_s26, %s2002_s26 }
  0x1f   :  { %p2009_p0 = por %p2008_p13, %p2007_p12 }
  0x21   :  { %p2010_p1 = pnand %p2009_p0, %p2003_p11 }
  0x23   :  { %2013 = shalt.err (!%p2010_p1)
}
  0x24   :  { %58 = dma.hbm_to_vmem [thread:$0]  %s2813_s3, 64, %s56_s30, [#allocation11]  }
  0x25   :  { %s2182_s28 = smov [#allocation13]   ;;  %s2183_s9 = smov [#allocation4]  }
  0x26   :  { %s75_s29 = sshll.u32 %s2182_s28, 4  ;;  %s25_s10 = sshll.u32 %s2183_s9, 4  ;;  %s76_s29 = int_to_ptr.vmem [resolvable:$true] %s75_s29  ;;  %s26_s10 = int_to_ptr.vmem [resolvable:$true] %s25_s10 }
  0x27   :  { %s2014_s13 = scalar_lea.hbm %s2815_s5, 64 }
  0x28   :  { %p2015_p2 = scmp.ne.s32.totalorder %s2815_s5, %s2014_s13  ;;  %p2018_p3 = scmp.lt.u32.totalorder %s2014_s13, %s2815_s5 }
  0x2a   :  { %p2020_p4 = pnand %p2018_p3, %p2015_p2 }
  0x2c   :  { %2023 = shalt.err (!%p2020_p4)
}
  0x2d   :  { %s2024_s3 = scalar_lea.vmem %s76_s29, 64  ;;  %p2029_p6 = scmp.lt.s32.totalorder %s76_s29, %s76_s29 }
  0x2e   :  { %p2025_p5 = scmp.ne.s32.totalorder %s76_s29, %s2024_s3  ;;  %p2030_p7 = scmp.lt.s32.totalorder %s2024_s3, %s2024_s3 }
  0x30   :  { %p2031_p8 = por %p2030_p7, %p2029_p6 }
  0x32   :  { %p2032_p9 = pnand %p2031_p8, %p2025_p5 }
  0x34   :  { %2035 = shalt.err (!%p2032_p9)
}
  0x35   :  { %78 = dma.hbm_to_vmem [thread:$0]  %s2815_s5, 64, %s76_s29, [#allocation14]  }
  0x36   :  { %s2036_s21 = scalar_lea.hbm %s2810_s0, 384 }
  0x37   :  { %p2037_p10 = scmp.ne.s32.totalorder %s2810_s0, %s2036_s21  ;;  %p2040_p11 = scmp.lt.u32.totalorder %s2036_s21, %s2810_s0 }
  0x39   :  { %p2042_p12 = pnand %p2040_p11, %p2037_p10 }
  0x3b   :  { %2045 = shalt.err (!%p2042_p12)
}
  0x3c   :  { %s2046_s26 = scalar_lea.vmem %s26_s10, 384  ;;  %p2051_p0 = scmp.lt.s32.totalorder %s26_s10, %s26_s10 }
  0x3d   :  { %p2047_p13 = scmp.ne.s32.totalorder %s26_s10, %s2046_s26  ;;  %p2052_p1 = scmp.lt.s32.totalorder %s2046_s26, %s2046_s26 }
  0x3f   :  { %p2053_p2 = por %p2052_p1, %p2051_p0 }
  0x41   :  { %p2054_p3 = pnand %p2053_p2, %p2047_p13 }
  0x43   :  { %2057 = shalt.err (!%p2054_p3)
}
  0x44   :  { %28 = dma.hbm_to_vmem [thread:$0]  %s2810_s0, 384, %s26_s10, [#allocation5]  }
  0x45   :  { %s2184_s27 = smov [#allocation9]   ;;  %s2185_s29 = smov [#allocation12]  }
  0x46   :  { %s45_s28 = sshll.u32 %s2184_s27, 4  ;;  %s65_s9 = sshll.u32 %s2185_s29, 4  ;;  %s46_s28 = int_to_ptr.vmem [resolvable:$true] %s45_s28  ;;  %s66_s9 = int_to_ptr.vmem [resolvable:$true] %s65_s9 }
  0x47   :  { %s2058_s13 = scalar_lea.hbm %s2812_s2, 32 }
  0x48   :  { %p2059_p4 = scmp.ne.s32.totalorder %s2812_s2, %s2058_s13  ;;  %p2062_p5 = scmp.lt.u32.totalorder %s2058_s13, %s2812_s2 }
  0x4a   :  { %p2064_p6 = pnand %p2062_p5, %p2059_p4 }
  0x4c   :  { %2067 = shalt.err (!%p2064_p6)
}
  0x4d   :  { %s2068_s0 = scalar_lea.vmem %s46_s28, 32  ;;  %p2073_p8 = scmp.lt.s32.totalorder %s46_s28, %s46_s28 }
  0x4e   :  { %p2069_p7 = scmp.ne.s32.totalorder %s46_s28, %s2068_s0  ;;  %p2074_p9 = scmp.lt.s32.totalorder %s2068_s0, %s2068_s0 }
  0x50   :  { %p2075_p10 = por %p2074_p9, %p2073_p8 }
  0x52   :  { %p2076_p11 = pnand %p2075_p10, %p2069_p7 }
  0x54   :  { %2079 = shalt.err (!%p2076_p11)
}
  0x55   :  { %48 = dma.hbm_to_vmem [thread:$0]  %s2812_s2, 32, %s46_s28, [#allocation8]  }
  0x56   :  { %s2080_s19 = scalar_lea.hbm %s2814_s4, 64 }
  0x57   :  { %p2081_p12 = scmp.ne.s32.totalorder %s2814_s4, %s2080_s19  ;;  %p2084_p13 = scmp.lt.u32.totalorder %s2080_s19, %s2814_s4 }
  0x59   :  { %p2086_p0 = pnand %p2084_p13, %p2081_p12 }
  0x5b   :  { %2089 = shalt.err (!%p2086_p0)
}
  0x5c   :  { %s2090_s24 = scalar_lea.vmem %s66_s9, 64  ;;  %p2095_p2 = scmp.lt.s32.totalorder %s66_s9, %s66_s9 }
  0x5d   :  { %p2091_p1 = scmp.ne.s32.totalorder %s66_s9, %s2090_s24  ;;  %p2096_p3 = scmp.lt.s32.totalorder %s2090_s24, %s2090_s24 }
  0x5f   :  { %p2097_p4 = por %p2096_p3, %p2095_p2 }
  0x61   :  { %p2098_p5 = pnand %p2097_p4, %p2091_p1 }
  0x63   :  { %2101 = shalt.err (!%p2098_p5)
}
  0x64   :  { %68 = dma.hbm_to_vmem [thread:$0]  %s2814_s4, 64, %s66_s9, [#allocation11]  }
  0x65   :  { %s2186_s26 = smov [#allocation15]   ;;  %s2187_s1 = smov [#allocation16]  }
  0x66   :  { %s85_s5 = sshll.u32 %s2186_s26, 4  ;;  %s95_s27 = sshll.u32 %s2187_s1, 4  ;;  %s86_s5 = int_to_ptr.vmem [resolvable:$true] %s85_s5  ;;  %s96_s27 = int_to_ptr.vmem [resolvable:$true] %s95_s27 }
  0x67   :  { %s2102_s11 = scalar_lea.hbm %s2816_s6, 64 }
  0x68   :  { %p2103_p6 = scmp.ne.s32.totalorder %s2816_s6, %s2102_s11  ;;  %p2106_p7 = scmp.lt.u32.totalorder %s2102_s11, %s2816_s6 }
  0x6a   :  { %p2108_p8 = pnand %p2106_p7, %p2103_p6 }
  0x6c   :  { %2111 = shalt.err (!%p2108_p8)
}
  0x6d   :  { %s2112_s4 = scalar_lea.vmem %s86_s5, 64  ;;  %p2117_p10 = scmp.lt.s32.totalorder %s86_s5, %s86_s5 }
  0x6e   :  { %p2113_p9 = scmp.ne.s32.totalorder %s86_s5, %s2112_s4  ;;  %p2118_p11 = scmp.lt.s32.totalorder %s2112_s4, %s2112_s4 }
  0x70   :  { %p2119_p12 = por %p2118_p11, %p2117_p10 }
  0x72   :  { %p2120_p13 = pnand %p2119_p12, %p2113_p9 }
  0x74   :  { %2123 = shalt.err (!%p2120_p13)
}
  0x75   :  { %88 = dma.hbm_to_vmem [thread:$0]  %s2816_s6, 64, %s86_s5, [#allocation14]  }
  0x76   :  { %s2124_s10 = scalar_lea.hbm %s2817_s7, 96 }
  0x77   :  { %p2125_p0 = scmp.ne.s32.totalorder %s2817_s7, %s2124_s10  ;;  %p2128_p1 = scmp.lt.u32.totalorder %s2124_s10, %s2817_s7 }
  0x79   :  { %p2130_p2 = pnand %p2128_p1, %p2125_p0 }
  0x7b   :  { %2133 = shalt.err (!%p2130_p2)
}
  0x7c   :  { %s2134_s20 = scalar_lea.vmem %s96_s27, 96  ;;  %p2139_p4 = scmp.lt.s32.totalorder %s96_s27, %s96_s27 }
  0x7d   :  { %p2135_p3 = scmp.ne.s32.totalorder %s96_s27, %s2134_s20  ;;  %p2140_p5 = scmp.lt.s32.totalorder %s2134_s20, %s2134_s20 }
  0x7f   :  { %p2141_p6 = por %p2140_p5, %p2139_p4 }
  0x81   :  { %p2142_p7 = pnand %p2141_p6, %p2135_p3 }
  0x83   :  { %2145 = shalt.err (!%p2142_p7)
}
  0x84   :  { %98 = dma.hbm_to_vmem [thread:$0]  %s2817_s7, 96, %s96_s27, [#allocation17]  }
  0x85   :  { %2168 = dma.done.wait [#allocation5], 384  }
  0x86   :  { %2169 = vsyncadd [#allocation5], 4294966912 }
  0x87   :  { %2170 = dma.done.wait [#allocation8], 64  }
  0x88   :  { %2171 = vsyncadd [#allocation8], 4294967232 }
  0x89   :  { %2172 = dma.done.wait [#allocation11], 128  }
  0x8a   :  { %2173 = vsyncadd [#allocation11], 4294967168 }
  0x8b   :  { %2174 = dma.done.wait [#allocation14], 128  }
  0x8c   :  { %2175 = vsyncadd [#allocation14], 4294967168 }
  0x8d   :  { %2176 = dma.done.wait [#allocation17], 96  }
  0x8e   :  { %2177 = vsyncadd [#allocation17], 4294967200  ;;  %vm126_vm0 = vcmask 1041472   ;;  %vm127_vm1 = vcmask 60418   ;;  %v159_v0 = vlaneseq  ;;  %v2188_v1 = vmov 0   ;;  %v130_v6 = vld [vmem:[#allocation4] sm:$0xff] }
  0x8f   :  { %vm128_vm2 = vmor %vm127_vm1, %vm126_vm0  ;;  %125 = vst [vmem:[#allocation2] sm:$0x3] %v2188_v1  ;;  %759 = vmatprep.mubr.bf16.mxu0 %v2188_v1  ;;  %800 = vmatprep.mubr.bf16.mxu1 %v2188_v1  ;;  %v2189_v2 = vmov 1983009808   ;;  %v131_v7 = vld [vmem:[#allocation4 + $0x8] sm:$0xff]  ;;  %v132_v8 = vld [vmem:[#allocation4 + $0x10] sm:$0xff]  ;;  %v136_v9 = vcombine.high %v130_v6, %v130_v6 }
  0x90   :  { %129 = vst.msk [vmem:[#allocation2 + $0xc] sm:$0xf] %vm128_vm2, %v2188_v1  ;;  %v157_v3 = vunpack.c.l.s4 %v2189_v2  ;;  %1895 = vset.pattern.permute.xlu0 %v2188_v1  ;;  %1896 = vset.pattern.permute.xlu1 %v2188_v1  ;;  %v2347_v5 = vshrl.u32 %v159_v0, 7  ;;  %vm182_vm3 = vcmask 1041408   ;;  %v137_v10 = vcombine.high %v131_v7, %v131_v7  ;;  %s2190_s7 = smov 19   ;;  %s2191_s22 = smov 18  }
  0x91   :  { %v138_v11 = vcombine.high %v132_v8, %v132_v8  ;;  %v1808_v13 = vpack.c.bf16 %v136_v9, %v130_v6  ;;  %vm2354_vm4 = vmor %vm127_vm1, %vm182_vm3  ;;  %vm232_vm5 = vcmask 62468   ;;  %s2192_s23 = smov 1   ;;  %s2193_s24 = smov 17   ;;  %vm222_vm7 = vcmask 154624  }
  0x92   :  { %v158_v4 = vunpack.c.0.s8 %v157_v3  ;;  %v1809_v14 = vpack.c.bf16 %v137_v10, %v131_v7  ;;  %vm2364_vm6 = vmor %vm232_vm5, %vm182_vm3  ;;  %s2194_s2 = smov 127   ;;  %s2195_s25 = smov 111   ;;  %vm220_vm8 = vcmask 1043456   ;;  %vm272_vm9 = vcmask 146432  }
  0x93   :  { %v1810_v15 = vpack.c.bf16 %v138_v11, %v132_v8  ;;  %s2196_s26 = smov 110   ;;  %s2197_s5 = smov 109   ;;  %vm380_vm10 = vcmask 7168   ;;  %vm322_vm11 = vcmask 138240   ;;  %vm461_vm12 = vcmask 1039360  }
  0x94   :  { %v2350_v12 = vsub.s32 %v158_v4, %v2347_v5  ;;  %vm508_vm13 = vcmask 908288   ;;  %vm282_vm14 = vcmask 1043458   ;;  %vm283_vm15 = vcmask 64518   ;;  %s2198_s1 = smov [#allocation18]  }
  0x95   :  { %vm556_vm0 = vcmask 900096   ;;  %vm2447_vm1 = vmor %vm283_vm15, %vm282_vm14  ;;  %vm603_vm2 = vcmask 891904   ;;  %vm705_vm5 = vcmask 293888   ;;  %vm897_vm14 = vcmask 60416   ;;  %s1795_s27 = sshll.u32 %s2198_s1, 4  ;;  %s1796_s27 = int_to_ptr.vmem [resolvable:$true] %s1795_s27 }
  0x96   :  { %v162_v17 = vrot.slane %v1808_v13, %v2350_v12  ;;  %v169_v18 = vrot.slane %v1809_v14, %v2350_v12  ;;  %v178_v19 = vrot.slane %v1810_v15, %v2350_v12  ;;  %s2146_s28 = scalar_lea.vmem %s1796_s27, 384  ;;  %p2151_p9 = scmp.lt.s32.totalorder %s1796_s27, %s1796_s27 }
  0x97   :  { %p2147_p8 = scmp.ne.s32.totalorder %s1796_s27, %s2146_s28  ;;  %p2152_p10 = scmp.lt.s32.totalorder %s2146_s28, %s2146_s28 }
  0x98   :  { %v170_v20 = vcombine.low %v162_v17, %v169_v18  ;;  %184 = vst.msk [vmem:[#allocation2 + $0xa] sm:$0xf] %vm2354_vm4, %v178_v19  ;;  %v1966_v21 = vcombine.low %v169_v18, %v169_v18  ;;  %v1967_v32 = vcombine.low %v162_v17, %v162_v17 }
  0x99   :  { %p2153_p11 = por %p2152_p10, %p2151_p9 }
  0x9a   :  { %181 = vst [vmem:[#allocation2 + $0x2] sm:$0xff] %v170_v20  ;;  %1814 = vst.sshfl [vmem:[#allocation3 + $0x30] sm:$0xf pattern:$0x76325410] %v170_v20  ;;  %v442_v27 = vrot.slane %v170_v20, %v2350_v12  ;;  %v435_v33 = vrot.slane %v1967_v32, %v2350_v12  ;;  %v490_v34 = vrot.slane %v1966_v21, %v2350_v12 }
  0x9b   :  { %1815 = vst.sshfl [vmem:[#allocation3 + $0x38] sm:$0xf pattern:$0x76325410] %v1966_v21  ;;  %p2154_p12 = pnand %p2153_p11, %p2147_p8 }
  0x9f   :  { %v1816_v22 = vld.sshfl [vmem:[#allocation2 + $0xa] sm:$0x33 pattern:$0x76325410] }
  0xa0   :  { %423 = vst.msk [vmem:[#allocation3 + $0x40] sm:$0x33] %vm2364_vm6, %v1816_v22  ;;  %v1904_v40 = vld [vmem:[#allocation2 + $0xa] ss:$0 sps:$4 sm:$0xff]  }
  0xa1   :  { %v1811_v24 = vld.sshfl [vmem:[#allocation2 + $0x8] sm:$0x33 pattern:$0x76325410]  ;;  %v235_v25 = vld [vmem:[#allocation2] sm:$0xff]  ;;  %v450_v42 = vrot.slane %v1904_v40, %v2350_v12 }
  0xa2   :  { %215 = vrot.lane.b32.xlu0 %v1811_v24, %s2190_s7  ;;  %v253_v26 = vrot.slane %v235_v25, %v2350_v12  ;;  %v189_v28 = vcombine.high %v235_v25, %v235_v25  ;;  %v239_v29 = vcombine.low %v235_v25, %v235_v25  ;;  %v1902_v35 = vld [vmem:[#allocation2 + $0x8] ss:$0 sps:$4 sm:$0xff]   ;;  %v1905_v43 = vld [vmem:[#allocation2 + $0xa] ss:$0 sps:$4 sm:$0xff]  }
  0xa3   :  { %v334_v36 = vld [vmem:[#allocation2 + $0x8] sm:$0x3f]  ;;  %v261_v37 = vrot.slane %v1902_v35, %v2350_v12  ;;  %v545_v44 = vrot.slane %v1905_v43, %v2350_v12 }
  0xa4   :  { %264 = vrot.lane.b32.xlu1 %v253_v26, %s2191_s22  ;;  %v203_v30 = vrot.slane %v189_v28, %v2350_v12  ;;  %v246_v31 = vrot.slane %v239_v29, %v2350_v12  ;;  %v352_v38 = vcombine.low %v334_v36, %v334_v36  ;;  %v366_v41 = vrot.slane %v334_v36, %v2350_v12 }
  0xa6   :  { %211 = vrot.lane.b32.xlu0 %v253_v26, %s2190_s7  ;;  %v359_v39 = vrot.slane %v352_v38, %v2350_v12 }
  0xa8   :  { %369 = vrot.lane.b32.xlu1 %v253_v26, %s2192_s23 }
  0xaa   :  { %312 = vrot.lane.b32.xlu0 %v253_v26, %s2193_s24 }
  0xac   :  { %453 = vrot.lane.b32.xlu1 %v442_v27, %s2194_s2 }
  0xae   :  { %498 = vrot.lane.b32.xlu0 %v442_v27, %s2195_s25 }
  0xb0   :  { %548 = vrot.lane.b32.xlu1 %v442_v27, %s2196_s26 }
  0xb2   :  { %213 = vrot.lane.b32.xlu0 %v203_v30, %s2190_s7 }
  0xb4   :  { %262 = vrot.lane.b32.xlu1 %v246_v31, %s2191_s22 }
  0xb6   :  { %367 = vrot.lane.b32.xlu0 %v246_v31, %s2192_s23 }
  0xb8   :  { %314 = vrot.lane.b32.xlu1 %v203_v30, %s2193_s24 }
  0xba   :  { %451 = vrot.lane.b32.xlu0 %v435_v33, %s2194_s2 }
  0xbc   :  { %500 = vrot.lane.b32.xlu1 %v490_v34, %s2195_s25 }
  0xbe   :  { %546 = vrot.lane.b32.xlu0 %v435_v33, %s2196_s26 }
  0xc0   :  { %266 = vrot.lane.b32.xlu1 %v261_v37, %s2191_s22 }
  0xc2   :  { %316 = vrot.lane.b32.xlu0 %v1811_v24, %s2193_s24 }
  0xc4   :  { %371 = vrot.lane.b32.xlu1 %v359_v39, %s2192_s23 }
  0xc6   :  { %593 = vrot.lane.b32.xlu0 %v442_v27, %s2197_s5 }
  0xc8   :  { %595 = vrot.lane.b32.xlu1 %v490_v34, %s2197_s5 }
  0xca   :  { %373 = vrot.lane.b32.xlu0 %v366_v41, %s2192_s23 }
  0xcc   :  { %455 = vrot.lane.b32.xlu1 %v450_v42, %s2194_s2 }
  0xce   :  { %502 = vrot.lane.b32.xlu0 %v1816_v22, %s2195_s25 }
  0xd0   :  { %550 = vrot.lane.b32.xlu1 %v545_v44, %s2196_s26 }
  0xd2   :  { %597 = vrot.lane.b32.xlu0 %v1816_v22, %s2197_s5 }
 0x114   :  { %v216_v45 = vpop.permute.xlu0 %215 }
 0x115   :  { %v219_v46 = vrot.slane %v216_v45, 4 }
 0x116   :  { %v2406_v47 = vpop.permute.xlu1 %264 }
 0x117   :  { %v226_v48 = vsel %vm222_vm7, %v216_v45, %v219_v46  ;;  %v269_v59 = vrot.slane %v2406_v47, 4 }
 0x118   :  { %234 = vst.msk [vmem:[#allocation3 + $0x10] sm:$0x33] %vm2364_vm6, %v226_v48  ;;  %v212_v49 = vpop.permute.xlu0 %211 }
 0x119   :  { %v217_v56 = vrot.slane %v212_v49, 4 }
 0x11a   :  { %v2411_v50 = vpop.permute.xlu1 %369 }
 0x11b   :  { %v376_v3 = vrot.slane %v2411_v50, 4 }
 0x11c   :  { %v313_v51 = vpop.permute.xlu0 %312 }
 0x11d   :  { %v318_v9 = vrot.slane %v313_v51, 4 }
 0x11e   :  { %v2413_v52 = vpop.permute.xlu1 %453 }
 0x11f   :  { %v458_v15 = vrot.slane %v2413_v52, 4 }
 0x120   :  { %v499_v53 = vpop.permute.xlu0 %498 }
 0x121   :  { %v504_v21 = vrot.slane %v499_v53, 4 }
 0x122   :  { %v2415_v54 = vpop.permute.xlu1 %548 }
 0x123   :  { %v553_v27 = vrot.slane %v2415_v54, 4 }
 0x124   :  { %v214_v55 = vpop.permute.xlu0 %213 }
 0x125   :  { %v218_v57 = vrot.slane %v214_v55, 4 }
 0x126   :  { %v263_v58 = vpop.permute.xlu1 %262 }
 0x127   :  { %v221_v60 = vsel %vm220_vm8, %v217_v56, %v218_v57  ;;  %v224_v61 = vsel %vm220_vm8, %v218_v57, %v219_v46  ;;  %v268_v62 = vrot.slane %v263_v58, 4 }
 0x128   :  { %v223_v63 = vsel %vm222_vm7, %v212_v49, %v221_v60  ;;  %v225_v0 = vsel %vm222_vm7, %v214_v55, %v224_v61  ;;  %v368_v2 = vpop.permute.xlu0 %367 }
 0x129   :  { %230 = vst [vmem:[#allocation3] sm:$0x33] %v223_v63  ;;  %231 = vst [vmem:[#allocation3 + $0x8] sm:$0x33] %v225_v0  ;;  %v271_v4 = vsel %vm220_vm8, %v268_v62, %v269_v59  ;;  %v375_v6 = vrot.slane %v368_v2, 4 }
 0x12a   :  { %v273_v7 = vsel %vm272_vm9, %v263_v58, %v271_v4  ;;  %v315_v8 = vpop.permute.xlu1 %314 }
 0x12b   :  { %280 = vst [vmem:[#allocation3] sm:$0xcc] %v273_v7  ;;  %v379_v10 = vsel %vm220_vm8, %v375_v6, %v376_v3  ;;  %v319_v11 = vrot.slane %v315_v8, 4 }
 0x12c   :  { %v381_v13 = vsel %vm380_vm10, %v368_v2, %v379_v10  ;;  %v452_v14 = vpop.permute.xlu0 %451 }
 0x12d   :  { %389 = vst [vmem:[#allocation3 + $0x18] sm:$0xcc] %v381_v13  ;;  %v321_v17 = vsel %vm220_vm8, %v318_v9, %v319_v11  ;;  %v457_v18 = vrot.slane %v452_v14, 4 }
 0x12e   :  { %v323_v19 = vsel %vm322_vm11, %v313_v51, %v321_v17  ;;  %v2432_v20 = vpop.permute.xlu1 %500 }
 0x12f   :  { %330 = vst [vmem:[#allocation3 + $0x18] sm:$0x33] %v323_v19  ;;  %v460_v22 = vsel %vm220_vm8, %v457_v18, %v458_v15  ;;  %v505_v24 = vrot.slane %v2432_v20, 4 }
 0x130   :  { %v462_v25 = vsel %vm461_vm12, %v452_v14, %v460_v22  ;;  %v547_v26 = vpop.permute.xlu0 %546 }
 0x131   :  { %469 = vst [vmem:[#allocation3 + $0x30] sm:$0xcc] %v462_v25  ;;  %v507_v28 = vsel %vm220_vm8, %v504_v21, %v505_v24  ;;  %v552_v29 = vrot.slane %v547_v26, 4 }
 0x132   :  { %v509_v30 = vsel %vm508_vm13, %v499_v53, %v507_v28  ;;  %v267_v31 = vpop.permute.xlu1 %266 }
 0x133   :  { %516 = vst [vmem:[#allocation3 + $0x48] sm:$0x33] %v509_v30  ;;  %v555_v32 = vsel %vm220_vm8, %v552_v29, %v553_v27  ;;  %v270_v34 = vrot.slane %v267_v31, 4  ;;  %v614_v30 = vld [vmem:[#allocation7] sm:$0x3] }
 0x134   :  { %v557_v35 = vsel %vm556_vm0, %v547_v26, %v555_v32  ;;  %v317_v36 = vpop.permute.xlu0 %316 }
 0x135   :  { %564 = vst [vmem:[#allocation3 + $0x48] sm:$0xcc] %v557_v35  ;;  %v274_v37 = vsel %vm220_vm8, %v269_v59, %v270_v34  ;;  %v276_v38 = vsel %vm272_vm9, %v267_v31, %v270_v34  ;;  %v320_v39 = vrot.slane %v317_v36, 4 }
 0x136   :  { %v275_v40 = vsel %vm272_vm9, %v2406_v47, %v274_v37  ;;  %285 = vst.msk [vmem:[#allocation3 + $0x10] sm:$0xcc] %vm2447_vm1, %v276_v38  ;;  %v372_v41 = vpop.permute.xlu1 %371  ;;  %v1906_v42 = vld [vmem:[#allocation3 + $0x4] ss:$24 sps:$4 sm:$0xff]   ;;  %v1908_v43 = vld [vmem:[#allocation3] ss:$24 sps:$4 sm:$0xff]  }
 0x137   :  { %281 = vst [vmem:[#allocation3 + $0x8] sm:$0xcc] %v275_v40  ;;  %v324_v44 = vsel %vm220_vm8, %v319_v11, %v320_v39  ;;  %v326_v45 = vsel %vm322_vm11, %v317_v36, %v320_v39  ;;  %v377_v46 = vrot.slane %v372_v41, 4  ;;  %727 = vmatprep.subr.bf16.mxu0 %v1906_v42 }
 0x138   :  { %v325_v48 = vsel %vm322_vm11, %v315_v8, %v324_v44  ;;  %332 = vst.msk [vmem:[#allocation3 + $0x28] sm:$0x33] %vm2364_vm6, %v326_v45  ;;  %v594_v49 = vpop.permute.xlu0 %593  ;;  %728 = vmatpush1.bf16.msra.mxu0 %v1908_v43 }
 0x139   :  { %331 = vst [vmem:[#allocation3 + $0x20] sm:$0x33] %v325_v48  ;;  %v382_v47 = vsel %vm220_vm8, %v376_v3, %v377_v46  ;;  %v599_v51 = vrot.slane %v594_v49, 4  ;;  %v853_v48 = vsub.s32 0, %v2347_v5 }
 0x13a   :  { %v383_v53 = vsel %vm380_vm10, %v2411_v50, %v382_v47  ;;  %v596_v55 = vpop.permute.xlu1 %595  ;;  %v124_v47 = vld [vmem:[#allocation16] sm:$0x3f] }
 0x13b   :  { %390 = vst [vmem:[#allocation3 + $0x20] sm:$0xcc] %v383_v53  ;;  %v600_v56 = vrot.slane %v596_v55, 4 }
 0x13c   :  { %v374_v57 = vpop.permute.xlu0 %373  ;;  %v1909_v58 = vld [vmem:[#allocation3 + $0x34] ss:$24 sps:$4 sm:$0xff]   ;;  %v1911_v59 = vld [vmem:[#allocation3 + $0x30] ss:$24 sps:$4 sm:$0xff]  }
 0x13d   :  { %v602_v60 = vsel %vm220_vm8, %v599_v51, %v600_v56  ;;  %v378_v61 = vrot.slane %v374_v57, 4  ;;  %729 = vmatprep.subr.bf16.mxu0 %v1909_v58 }
 0x13e   :  { %v604_v62 = vsel %vm603_vm2, %v594_v49, %v602_v60  ;;  %v456_v63 = vpop.permute.xlu1 %455  ;;  %730 = vmatpush1.bf16.msra.mxu0 %v1911_v59  ;;  %v857_v49 = vsub.s32 1, %v2347_v5  ;;  %v861_v59 = vsub.s32 2, %v2347_v5  ;;  %v865_v60 = vsub.s32 3, %v2347_v5 }
 0x13f   :  { %611 = vst [vmem:[#allocation3 + $0x60] sm:$0x33] %v604_v62  ;;  %v384_v0 = vsel %vm220_vm8, %v377_v46, %v378_v61  ;;  %v459_v2 = vrot.slane %v456_v63, 4  ;;  %v869_v61 = vsub.s32 4, %v2347_v5 }
 0x140   :  { %v385_v50 = vsel %vm380_vm10, %v372_v41, %v384_v0  ;;  %v503_v3 = vpop.permute.xlu0 %502  ;;  %v2532_v0 = vrot.slane %v124_v47, %v861_v59 }
 0x141   :  { %391 = vst.msk [vmem:[#allocation3 + $0x28] sm:$0xcc] %vm2447_vm1, %v385_v50  ;;  %v463_v4 = vsel %vm220_vm8, %v458_v15, %v459_v2  ;;  %v465_v6 = vsel %vm461_vm12, %v456_v63, %v459_v2  ;;  %v506_v7 = vrot.slane %v503_v3, 4  ;;  %v873_v2 = vsub.s32 5, %v2347_v5 }
 0x142   :  { %v464_v8 = vsel %vm461_vm12, %v2413_v52, %v463_v4  ;;  %471 = vst.msk [vmem:[#allocation3 + $0x40] sm:$0xcc] %vm2447_vm1, %v465_v6  ;;  %v551_v9 = vpop.permute.xlu1 %550  ;;  %v1912_v10 = vld [vmem:[#allocation3 + $0xc] ss:$24 sps:$4 sm:$0xff]   ;;  %v1914_v11 = vld [vmem:[#allocation3 + $0x8] ss:$24 sps:$4 sm:$0xff]   ;;  %v2535_v50 = vrot.slane %v124_v47, %v865_v60 }
 0x143   :  { %470 = vst [vmem:[#allocation3 + $0x38] sm:$0xcc] %v464_v8  ;;  %v510_v13 = vsel %vm220_vm8, %v505_v24, %v506_v7  ;;  %v512_v14 = vsel %vm508_vm13, %v503_v3, %v506_v7  ;;  %v554_v15 = vrot.slane %v551_v9, 4  ;;  %768 = vmatprep.subr.bf16.mxu1 %v1912_v10  ;;  %v2537_v3 = vrot.slane %v124_v47, %v869_v61 }
 0x144   :  { %v511_v17 = vsel %vm508_vm13, %v2432_v20, %v510_v13  ;;  %518 = vst.msk [vmem:[#allocation3 + $0x58] sm:$0x33] %vm2364_vm6, %v512_v14  ;;  %v598_v52 = vpop.permute.xlu0 %597  ;;  %769 = vmatpush1.bf16.msra.mxu1 %v1914_v11  ;;  %v2549_v11 = vrot.slane %v124_v47, %v873_v2 }
 0x145   :  { %517 = vst [vmem:[#allocation3 + $0x50] sm:$0x33] %v511_v17  ;;  %v558_v18 = vsel %vm220_vm8, %v553_v27, %v554_v15  ;;  %v560_v19 = vsel %vm556_vm0, %v551_v9, %v554_v15  ;;  %v601_v21 = vrot.slane %v598_v52, 4 }
 0x146   :  { %v559_v22 = vsel %vm556_vm0, %v2415_v54, %v558_v18  ;;  %566 = vst.msk [vmem:[#allocation3 + $0x58] sm:$0xcc] %vm2447_vm1, %v560_v19  ;;  %v627_v20 = vld [vmem:[#allocation3 + $0x60] sm:$0x33] }
 0x147   :  { %565 = vst [vmem:[#allocation3 + $0x50] sm:$0xcc] %v559_v22  ;;  %v605_v24 = vsel %vm220_vm8, %v600_v56, %v601_v21  ;;  %v607_v25 = vsel %vm603_vm2, %v598_v52, %v601_v21  ;;  %v1831_v26 = vcombine.high %v627_v20, %v627_v20  ;;  %v1830_v28 = vcombine.low %v627_v20, %v627_v20 }
 0x148   :  { %v606_v27 = vsel %vm603_vm2, %v596_v55, %v605_v24  ;;  %613 = vst.msk [vmem:[#allocation3 + $0x70] sm:$0x33] %vm2364_vm6, %v607_v25  ;;  %v1917_v29 = vld [vmem:[#allocation3 + $0x14] ss:$24 sps:$4 sm:$0xff]   ;;  %v1919_v31 = vld [vmem:[#allocation3 + $0x10] ss:$24 sps:$4 sm:$0xff]   ;;  %v2521_v55 = vrot.slane %v124_v47, %v853_v48  ;;  %v2523_v56 = vrot.slane %v124_v47, %v857_v49 }
 0x149   :  { %612 = vst [vmem:[#allocation3 + $0x68] sm:$0x33] %v606_v27  ;;  %1836 = vmatprep.subr.msk.bf16.mxu0 %vm182_vm3, %v1831_v26  ;;  %v710_v54 = vsel %vm182_vm3, %v1830_v28, 0  ;;  %v623_v37 = vld [vmem:[#allocation3 + $0x40] sm:$0xff] }
 0x14a   :  { %732 = vmatpush1.bf16.msra.mxu0 %v710_v54 }
 0x14b   :  { %809 = vmatprep.subr.bf16.mxu0 %v1917_v29 }
 0x14d   :  { %1837 = vmatmul.mubr.msk.bf16.vlgmr.msra.gmra.mrb[0].mxu0 %vm705_vm5, %v614_v30  ;;  %v626_v32 = vld [vmem:[#allocation3 + $0x58] sm:$0xff] }
 0x14e   :  { %v1920_v34 = vld [vmem:[#allocation3 + $0x44] ss:$24 sps:$4 sm:$0xff]   ;;  %810 = vmatpush1.bf16.msra.mxu0 %v1919_v31  ;;  %v1924_v36 = vld [vmem:[#allocation3 + $0x38] ss:$24 sps:$4 sm:$0xff]   ;;  %841 = vmatprep.mubr.bf16.mxu0 %v2188_v1  ;;  %v1828_v39 = vcombine.low %v623_v37, %v626_v32 }
 0x14f   :  { %v1922_v35 = vld [vmem:[#allocation3 + $0x3c] ss:$24 sps:$4 sm:$0xff]   ;;  %811 = vmatprep.subr.bf16.mxu0 %v1920_v34 }
 0x150   :  { %v629_v38 = vld [vmem:[#allocation3 + $0x70] sm:$0x33]  ;;  %770 = vmatprep.subr.bf16.mxu1 %v1922_v35  ;;  %v628_v40 = vld [vmem:[#allocation3 + $0x68] sm:$0x33] }
 0x151   :  { %v1835_v41 = vcombine.high %v629_v38, %v629_v38  ;;  %771 = vmatpush1.bf16.msra.mxu1 %v1924_v36  ;;  %v1833_v42 = vcombine.high %v628_v40, %v628_v40  ;;  %v1832_v43 = vcombine.low %v628_v40, %v628_v40  ;;  %v1834_v44 = vcombine.low %v629_v38, %v629_v38 }
 0x152   :  { %812 = vmatpush1.bf16.msra.mxu0 %v1828_v39 }
 0x153   :  { %1838 = vmatprep.subr.msk.bf16.mxu1 %vm182_vm3, %v1833_v42  ;;  %1840 = vmatprep.subr.msk.bf16.mxu0 %vm182_vm3, %v1835_v41  ;;  %v716_v45 = vsel %vm182_vm3, %v1832_v43, 0  ;;  %v722_v46 = vsel %vm182_vm3, %v1834_v44, 0 }
 0x155   :  { %773 = vmatpush1.bf16.msra.mxu1 %v716_v45 }
 0x156   :  { %814 = vmatpush1.bf16.msra.mxu0 %v722_v46 }
 0x158   :  { %1839 = vmatmul.mubr.msk.bf16.vlgmr.msra.gmra.mrb[0].mxu1 %vm705_vm5, %v614_v30 }
 0x159   :  { %1841 = vmatmul.mubr.msk.bf16.vlgmr.msra.gmra.mrb[4].mxu0 %vm705_vm5, %v614_v30  ;;  %1576 = vmatprep.mubr.bf16.mxu1 %v2188_v1 }
 0x15a   :  { %1617 = vmatprep.mubr.bf16.mxu0 %v2188_v1 }
 0x220   :  { %v2517_v51 = vpop.f32.mrb[0].mxu0 }
 0x221   :  { %v2519_v53 = vpop.f32.mrb[1].mxu0  ;;  %v881_v62 = vmul.f32 %v2521_v55, %v2517_v51 }
 0x222   :  { %v765_v57 = vpop.f32.mrb[2].mxu0  ;;  %v882_v63 = vmul.f32 %v2523_v56, %v2519_v53 }
 0x223   :  { %v766_v58 = vpop.f32.mrb[3].mxu0  ;;  %v888_v4 = vsel %vm220_vm8, %v881_v62, 0.0 }
 0x224   :  { %v889_v6 = vsel %vm220_vm8, %v882_v63, 0.0 }
 0x225   :  { %v890_v5 = vadd.f32 %v889_v6, %v888_v4 }
 0x22b   :  { %v2541_v7 = vpop.f32.mrb[0].mxu1 }
 0x22c   :  { %v883_v8 = vmul.f32 %v2532_v0, %v2541_v7  ;;  %v2545_v9 = vpop.f32.mrb[1].mxu1  ;;  %v2547_v10 = vpop.f32.mrb[4].mxu0 }
 0x22d   :  { %v884_v13 = vmul.f32 %v2535_v50, %v2545_v9  ;;  %v885_v14 = vmul.f32 %v2537_v3, %v2547_v10  ;;  %v806_v15 = vpop.f32.mrb[2].mxu1  ;;  %v2555_v17 = vpop.f32.mrb[5].mxu0 }
 0x22e   :  { %v891_v52 = vsel %vm220_vm8, %v883_v8, 0.0  ;;  %v807_v18 = vpop.f32.mrb[3].mxu1  ;;  %v847_v19 = vpop.f32.mrb[6].mxu0  ;;  %v886_v25 = vmul.f32 %v2549_v11, %v2555_v17  ;;  %v935_v15 = vld [vmem:[#allocation10] sm:$0xf] }
 0x22f   :  { %v892_v21 = vadd.f32 %v891_v52, %v890_v5  ;;  %v893_v22 = vsel %vm220_vm8, %v884_v13, 0.0  ;;  %v848_v20 = vpop.f32.mrb[7].mxu0  ;;  %v895_v24 = vsel %vm220_vm8, %v885_v14, 0.0  ;;  %v939_v19 = vld [vmem:[#allocation12] sm:$0xf] }
 0x230   :  { %v898_v27 = vsel %vm897_vm14, %v886_v25, 0.0 }
 0x231   :  { %v894_v26 = vadd.f32 %v893_v22, %v892_v21 }
 0x233   :  { %v896_v28 = vadd.f32 %v895_v24, %v894_v26 }
 0x235   :  { %v899_v29 = vadd.f32 %v898_v27, %v896_v28 }
 0x237   :  { %900 = vadd.xlane.f32.xlu1 %v899_v29 }
 0x2c4   :  { %v901_v54 = vpop.xlane.xlu1 %900 }
 0x2c5   :  { %v902_v30 = vmul.f32 0.001953125, %v901_v54 }
 0x2c7   :  { %v903_v31 = vmul.f32 %v902_v30, %v2521_v55  ;;  %v904_v32 = vmul.f32 %v902_v30, %v2523_v56  ;;  %v905_v34 = vmul.f32 %v902_v30, %v2532_v0  ;;  %v906_v35 = vmul.f32 %v902_v30, %v2535_v50 }
 0x2c8   :  { %v907_v36 = vmul.f32 %v902_v30, %v2537_v3  ;;  %v908_v37 = vmul.f32 %v902_v30, %v2549_v11 }
 0x2c9   :  { %v909_v38 = vsub.f32 %v881_v62, %v903_v31  ;;  %v910_v39 = vsub.f32 %v882_v63, %v904_v32  ;;  %v911_v40 = vsub.f32 %v883_v8, %v905_v34  ;;  %v912_v41 = vsub.f32 %v884_v13, %v906_v35 }
 0x2ca   :  { %v913_v42 = vsub.f32 %v885_v14, %v907_v36  ;;  %v914_v46 = vsub.f32 %v886_v25, %v908_v37 }
 0x2cb   :  { %v915_v43 = vmul.f32 %v909_v38, %v909_v38  ;;  %v916_v44 = vmul.f32 %v910_v39, %v910_v39  ;;  %v917_v45 = vmul.f32 %v911_v40, %v911_v40  ;;  %v918_v48 = vmul.f32 %v912_v41, %v912_v41 }
 0x2cc   :  { %v919_v58 = vmul.f32 %v913_v42, %v913_v42  ;;  %v920_v61 = vmul.f32 %v914_v46, %v914_v46 }
 0x2cd   :  { %v921_v49 = vsel %vm220_vm8, %v915_v43, 0.0  ;;  %v922_v47 = vsel %vm220_vm8, %v916_v44, 0.0  ;;  %v924_v59 = vsel %vm220_vm8, %v917_v45, 0.0  ;;  %v926_v62 = vsel %vm220_vm8, %v918_v48, 0.0 }
 0x2ce   :  { %v923_v57 = vadd.f32 %v922_v47, %v921_v49  ;;  %v928_v2 = vsel %vm220_vm8, %v919_v58, 0.0  ;;  %v930_v6 = vsel %vm897_vm14, %v920_v61, 0.0 }
 0x2d0   :  { %v925_v60 = vadd.f32 %v924_v59, %v923_v57 }
 0x2d2   :  { %v927_v63 = vadd.f32 %v926_v62, %v925_v60 }
 0x2d4   :  { %v929_v4 = vadd.f32 %v928_v2, %v927_v63 }
 0x2d6   :  { %v931_v8 = vadd.f32 %v930_v6, %v929_v4 }
 0x2d8   :  { %932 = vadd.xlane.f32.xlu0 %v931_v8 }
 0x365   :  { %v933_v5 = vpop.xlane.xlu0 %932 }
 0x366   :  { %v934_v13 = vmul.f32 0.001953125, %v933_v5 }
 0x368   :  { %v936_v14 = vadd.f32 1e-05, %v934_v13 }
 0x36a   :  { %1962 = vrsqrt.f32 %v936_v14 }
 0x374   :  { %v1963_v52 = vpop.eup %1962 }
 0x375   :  { %v938_v18 = vmul.f32 %v1963_v52, %v935_v15 }
 0x377   :  { %944 = vperm.xlu0 %1895, %v938_v18   ;;  %v940_v21 = vmul.f32 %v938_v18, %v902_v30 }
 0x379   :  { %v941_v22 = vsub.f32 %v939_v19, %v940_v21 }
 0x37b   :  { %955 = vperm.xlu1 %1896, %v941_v22  }
 0x3f6   :  { %v945_v20 = vpop.permute.xlu0 %944 }
 0x3f7   :  { %v947_v24 = vmul.f32 %v945_v20, %v2517_v51  ;;  %v948_v25 = vmul.f32 %v945_v20, %v2519_v53  ;;  %v949_v26 = vmul.f32 %v945_v20, %v2541_v7  ;;  %v950_v28 = vmul.f32 %v945_v20, %v2545_v9 }
 0x3f8   :  { %v951_v27 = vmul.f32 %v945_v20, %v2547_v10  ;;  %v952_v29 = vmul.f32 %v945_v20, %v2555_v17 }
 0x3fa   :  { %v956_v54 = vpop.permute.xlu1 %955 }
 0x3fb   :  { %v958_v31 = vadd.f32 %v956_v54, %v947_v24  ;;  %v959_v32 = vadd.f32 %v956_v54, %v948_v25  ;;  %v960_v34 = vadd.f32 %v956_v54, %v949_v26  ;;  %v961_v30 = vadd.f32 %v956_v54, %v950_v28 }
 0x3fc   :  { %v962_v35 = vadd.f32 %v956_v54, %v951_v27  ;;  %v963_v36 = vadd.f32 %v956_v54, %v952_v29 }
 0x3fd   :  { %v964_v37 = vmax.f32 %v958_v31, 0.0  ;;  %v965_v38 = vmax.f32 %v959_v32, 0.0  ;;  %v966_v51 = vmax.f32 %v960_v34, 0.0  ;;  %v967_v39 = vmax.f32 %v961_v30, 0.0 }
 0x3fe   :  { %v968_v53 = vmax.f32 %v962_v35, 0.0  ;;  %v969_v40 = vmax.f32 %v963_v36, 0.0 }
 0x3ff   :  { %v970_v7 = vmul.f32 %v964_v37, %v2521_v55  ;;  %v971_v9 = vmul.f32 %v965_v38, %v2523_v56  ;;  %v972_v10 = vmul.f32 %v966_v51, %v2532_v0  ;;  %v973_v17 = vmul.f32 %v967_v39, %v2535_v50 }
 0x400   :  { %v974_v41 = vmul.f32 %v968_v53, %v2537_v3  ;;  %v975_v42 = vmul.f32 %v969_v40, %v2549_v11 }
 0x401   :  { %v1842_v43 = vpack.c.bf16 %v971_v9, %v970_v7  ;;  %v1843_v44 = vpack.c.bf16 %v973_v17, %v972_v10 }
 0x402   :  { %v1844_v45 = vpack.c.bf16 %v975_v42, %v974_v41 }
 0x403   :  { %v996_v46 = vrot.slane %v1842_v43, %v2350_v12  ;;  %v1003_v48 = vrot.slane %v1843_v44, %v2350_v12 }
 0x404   :  { %v1012_v49 = vrot.slane %v1844_v45, %v2350_v12 }
 0x405   :  { %v1004_v47 = vcombine.low %v996_v46, %v1003_v48  ;;  %v1968_v57 = vcombine.low %v1003_v48, %v1003_v48  ;;  %v1969_v22 = vcombine.low %v996_v46, %v996_v46 }
 0x406   :  { %1016 = vst.msk [vmem:[#allocation2 + $0xa] sm:$0xf] %vm2354_vm4, %v1012_v49 }
 0x407   :  { %1015 = vst [vmem:[#allocation2 + $0x2] sm:$0xff] %v1004_v47  ;;  %1848 = vst.sshfl [vmem:[#allocation3 + $0x30] sm:$0xf pattern:$0x76325410] %v1004_v47  ;;  %v1264_v16 = vrot.slane %v1004_v47, %v2350_v12  ;;  %v1311_v62 = vrot.slane %v1968_v57, %v2350_v12  ;;  %v1257_v20 = vrot.slane %v1969_v22, %v2350_v12 }
 0x408   :  { %1849 = vst.sshfl [vmem:[#allocation3 + $0x38] sm:$0xf pattern:$0x76325410] %v1968_v57 }
 0x40d   :  { %v1850_v61 = vld.sshfl [vmem:[#allocation2 + $0xa] sm:$0x33 pattern:$0x76325410] }
 0x40e   :  { %v1845_v58 = vld.sshfl [vmem:[#allocation2 + $0x8] sm:$0x33 pattern:$0x76325410]  ;;  %v1156_v59 = vld [vmem:[#allocation2] sm:$0xff] }
 0x40f   :  { %1047 = vrot.lane.b32.xlu1 %v1845_v58, %s2190_s7  ;;  %v1174_v60 = vrot.slane %v1156_v59, %v2350_v12  ;;  %1245 = vst.msk [vmem:[#allocation3 + $0x40] sm:$0x33] %vm2364_vm6, %v1850_v61  ;;  %v1929_v63 = vld [vmem:[#allocation2 + $0xa] ss:$0 sps:$4 sm:$0xff]   ;;  %v1930_v4 = vld [vmem:[#allocation2 + $0x8] ss:$0 sps:$4 sm:$0xff]   ;;  %v1021_v13 = vcombine.high %v1156_v59, %v1156_v59  ;;  %v1067_v52 = vcombine.low %v1156_v59, %v1156_v59 }
 0x410   :  { %v1272_v2 = vrot.slane %v1929_v63, %v2350_v12  ;;  %v1157_v6 = vld [vmem:[#allocation2 + $0x8] sm:$0x3f]  ;;  %v1089_v8 = vrot.slane %v1930_v4, %v2350_v12 }
 0x411   :  { %1192 = vrot.lane.b32.xlu0 %v1174_v60, %s2192_s23  ;;  %v1175_v5 = vcombine.low %v1157_v6, %v1157_v6  ;;  %v1035_v15 = vrot.slane %v1021_v13, %v2350_v12  ;;  %v1934_v18 = vld [vmem:[#allocation2 + $0xa] ss:$0 sps:$4 sm:$0xff]   ;;  %v1074_v19 = vrot.slane %v1067_v52, %v2350_v12  ;;  %v1189_v24 = vrot.slane %v1157_v6, %v2350_v12 }
 0x412   :  { %v1365_v21 = vrot.slane %v1934_v18, %v2350_v12 }
 0x413   :  { %1140 = vrot.lane.b32.xlu1 %v1845_v58, %s2193_s24  ;;  %v1182_v14 = vrot.slane %v1175_v5, %v2350_v12 }
 0x415   :  { %1275 = vrot.lane.b32.xlu0 %v1264_v16, %s2194_s2 }
 0x417   :  { %1043 = vrot.lane.b32.xlu1 %v1174_v60, %s2190_s7 }
 0x419   :  { %1368 = vrot.lane.b32.xlu0 %v1264_v16, %s2196_s26 }
 0x41b   :  { %1092 = vrot.lane.b32.xlu1 %v1174_v60, %s2191_s22 }
 0x41d   :  { %1321 = vrot.lane.b32.xlu0 %v1311_v62, %s2195_s25 }
 0x41f   :  { %1136 = vrot.lane.b32.xlu1 %v1174_v60, %s2193_s24 }
 0x421   :  { %1277 = vrot.lane.b32.xlu0 %v1272_v2, %s2194_s2 }
 0x423   :  { %1319 = vrot.lane.b32.xlu1 %v1264_v16, %s2195_s25 }
 0x425   :  { %1094 = vrot.lane.b32.xlu0 %v1089_v8, %s2191_s22 }
 0x427   :  { %1412 = vrot.lane.b32.xlu1 %v1264_v16, %s2197_s5 }
 0x429   :  { %1194 = vrot.lane.b32.xlu0 %v1182_v14, %s2192_s23 }
 0x42b   :  { %1045 = vrot.lane.b32.xlu1 %v1035_v15, %s2190_s7 }
 0x42d   :  { %1414 = vrot.lane.b32.xlu0 %v1311_v62, %s2197_s5 }
 0x42f   :  { %1090 = vrot.lane.b32.xlu1 %v1074_v19, %s2191_s22 }
 0x431   :  { %1370 = vrot.lane.b32.xlu0 %v1365_v21, %s2196_s26 }
 0x433   :  { %1138 = vrot.lane.b32.xlu1 %v1035_v15, %s2193_s24 }
 0x437   :  { %1190 = vrot.lane.b32.xlu1 %v1074_v19, %s2192_s23 }
 0x43b   :  { %1273 = vrot.lane.b32.xlu1 %v1257_v20, %s2194_s2 }
 0x43f   :  { %1366 = vrot.lane.b32.xlu1 %v1257_v20, %s2196_s26 }
 0x443   :  { %1196 = vrot.lane.b32.xlu1 %v1189_v24, %s2192_s23 }
 0x447   :  { %1323 = vrot.lane.b32.xlu1 %v1850_v61, %s2195_s25 }
 0x44b   :  { %1416 = vrot.lane.b32.xlu1 %v1850_v61, %s2197_s5 }
 0x481   :  { %v1048_v25 = vpop.permute.xlu1 %1047 }
 0x482   :  { %v1051_v26 = vrot.slane %v1048_v25, 4 }
 0x483   :  { %v2630_v28 = vpop.permute.xlu0 %1192 }
 0x484   :  { %v1056_v27 = vsel %vm222_vm7, %v1048_v25, %v1051_v26  ;;  %v1199_v57 = vrot.slane %v2630_v28, 4 }
 0x485   :  { %1062 = vst.msk [vmem:[#allocation3 + $0x10] sm:$0x33] %vm2364_vm6, %v1056_v27  ;;  %v2635_v29 = vpop.permute.xlu1 %1140 }
 0x486   :  { %v1144_v54 = vrot.slane %v2635_v29, 4 }
 0x487   :  { %v2638_v12 = vpop.permute.xlu0 %1275 }
 0x488   :  { %v1149_v31 = vsel %vm322_vm11, %v2635_v29, %v1144_v54  ;;  %v1280_v38 = vrot.slane %v2638_v12, 4 }
 0x489   :  { %1155 = vst.msk [vmem:[#allocation3 + $0x28] sm:$0x33] %vm2364_vm6, %v1149_v31  ;;  %v1044_v32 = vpop.permute.xlu1 %1043 }
 0x48a   :  { %v1049_v60 = vrot.slane %v1044_v32, 4 }
 0x48b   :  { %v2646_v34 = vpop.permute.xlu0 %1368 }
 0x48c   :  { %v1373_v21 = vrot.slane %v2646_v34, 4 }
 0x48d   :  { %v1093_v30 = vpop.permute.xlu1 %1092 }
 0x48e   :  { %v1097_v41 = vrot.slane %v1093_v30, 4 }
 0x48f   :  { %v2648_v35 = vpop.permute.xlu0 %1321 }
 0x490   :  { %v1326_v53 = vrot.slane %v2648_v35, 4 }
 0x491   :  { %v2650_v36 = vpop.permute.xlu1 %1136 }
 0x493   :  { %v1278_v37 = vpop.permute.xlu0 %1277 }
 0x494   :  { %v1281_v51 = vrot.slane %v1278_v37, 4 }
 0x495   :  { %v1320_v39 = vpop.permute.xlu1 %1319 }
 0x496   :  { %v1284_v40 = vsel %vm220_vm8, %v1280_v38, %v1281_v51  ;;  %v1286_v7 = vsel %vm461_vm12, %v1278_v37, %v1281_v51  ;;  %v1325_v9 = vrot.slane %v1320_v39, 4 }
 0x497   :  { %v1285_v10 = vsel %vm461_vm12, %v2638_v12, %v1284_v40  ;;  %1292 = vst.msk [vmem:[#allocation3 + $0x40] sm:$0xcc] %vm2447_vm1, %v1286_v7  ;;  %v1095_v17 = vpop.permute.xlu0 %1094 }
 0x498   :  { %1291 = vst [vmem:[#allocation3 + $0x38] sm:$0xcc] %v1285_v10  ;;  %v1328_v42 = vsel %vm220_vm8, %v1325_v9, %v1326_v53  ;;  %v1098_v43 = vrot.slane %v1095_v17, 4 }
 0x499   :  { %v1329_v44 = vsel %vm508_vm13, %v1320_v39, %v1328_v42  ;;  %v1413_v45 = vpop.permute.xlu1 %1412 }
 0x49a   :  { %1336 = vst [vmem:[#allocation3 + $0x48] sm:$0x33] %v1329_v44  ;;  %v1101_v46 = vsel %vm220_vm8, %v1097_v41, %v1098_v43  ;;  %v1103_v48 = vsel %vm272_vm9, %v1095_v17, %v1098_v43  ;;  %v1418_v2 = vrot.slane %v1413_v45, 4 }
 0x49b   :  { %v1102_v49 = vsel %vm272_vm9, %v1093_v30, %v1101_v46  ;;  %1109 = vst.msk [vmem:[#allocation3 + $0x10] sm:$0xcc] %vm2447_vm1, %v1103_v48  ;;  %v2671_v47 = vpop.permute.xlu0 %1194 }
 0x49c   :  { %1108 = vst [vmem:[#allocation3 + $0x8] sm:$0xcc] %v1102_v49  ;;  %v1200_v58 = vrot.slane %v2671_v47, 4 }
 0x49d   :  { %v1046_v59 = vpop.permute.xlu1 %1045 }
 0x49e   :  { %v1204_v61 = vsel %vm220_vm8, %v1199_v57, %v1200_v58  ;;  %v1050_v16 = vrot.slane %v1046_v59, 4 }
 0x49f   :  { %v1205_v62 = vsel %vm380_vm10, %v2630_v28, %v1204_v61  ;;  %v2680_v63 = vpop.permute.xlu0 %1414 }
 0x4a0   :  { %1212 = vst [vmem:[#allocation3 + $0x20] sm:$0xcc] %v1205_v62  ;;  %v1052_v4 = vsel %vm220_vm8, %v1049_v60, %v1050_v16  ;;  %v1054_v6 = vsel %vm220_vm8, %v1050_v16, %v1051_v26  ;;  %v1419_v8 = vrot.slane %v2680_v63, 4  ;;  %v1142_v26 = vrot.slane %v2650_v36, 4 }
 0x4a1   :  { %v1053_v5 = vsel %vm222_vm7, %v1044_v32, %v1052_v4  ;;  %v1055_v13 = vsel %vm222_vm7, %v1046_v59, %v1054_v6  ;;  %v1091_v14 = vpop.permute.xlu1 %1090 }
 0x4a2   :  { %1060 = vst [vmem:[#allocation3] sm:$0x33] %v1053_v5  ;;  %1061 = vst [vmem:[#allocation3 + $0x8] sm:$0x33] %v1055_v13  ;;  %v1421_v15 = vsel %vm220_vm8, %v1418_v2, %v1419_v8  ;;  %v1096_v52 = vrot.slane %v1091_v14, 4 }
 0x4a3   :  { %v1422_v18 = vsel %vm603_vm2, %v1413_v45, %v1421_v15  ;;  %v1371_v19 = vpop.permute.xlu0 %1370 }
 0x4a4   :  { %1429 = vst [vmem:[#allocation3 + $0x60] sm:$0x33] %v1422_v18  ;;  %v1099_v22 = vsel %vm220_vm8, %v1096_v52, %v1097_v41  ;;  %v1374_v20 = vrot.slane %v1371_v19, 4  ;;  %v1432_v52 = vld [vmem:[#allocation9] sm:$0x3] }
 0x4a5   :  { %v1100_v24 = vsel %vm272_vm9, %v1091_v14, %v1099_v22  ;;  %v1139_v25 = vpop.permute.xlu1 %1138 }
 0x4a6   :  { %1107 = vst [vmem:[#allocation3] sm:$0xcc] %v1100_v24  ;;  %v1377_v28 = vsel %vm220_vm8, %v1373_v21, %v1374_v20  ;;  %v1379_v27 = vsel %vm556_vm0, %v1371_v19, %v1374_v20  ;;  %v1143_v31 = vrot.slane %v1139_v25, 4 }
 0x4a7   :  { %v1378_v32 = vsel %vm556_vm0, %v2646_v34, %v1377_v28  ;;  %1385 = vst.msk [vmem:[#allocation3 + $0x58] sm:$0xcc] %vm2447_vm1, %v1379_v27 }
 0x4a8   :  { %1384 = vst [vmem:[#allocation3 + $0x50] sm:$0xcc] %v1378_v32  ;;  %v1145_v30 = vsel %vm220_vm8, %v1142_v26, %v1143_v31  ;;  %v1147_v37 = vsel %vm220_vm8, %v1143_v31, %v1144_v54 }
 0x4a9   :  { %v1146_v51 = vsel %vm322_vm11, %v2650_v36, %v1145_v30  ;;  %v1148_v39 = vsel %vm322_vm11, %v1139_v25, %v1147_v37  ;;  %v1191_v40 = vpop.permute.xlu1 %1190 }
 0x4aa   :  { %1153 = vst [vmem:[#allocation3 + $0x18] sm:$0x33] %v1146_v51  ;;  %1154 = vst [vmem:[#allocation3 + $0x20] sm:$0x33] %v1148_v39  ;;  %v1198_v7 = vrot.slane %v1191_v40, 4 }
 0x4ab   :  { %v1445_v62 = vld [vmem:[#allocation3 + $0x60] sm:$0x33] }
 0x4ac   :  { %v1202_v34 = vsel %vm220_vm8, %v1198_v7, %v1199_v57  ;;  %v1865_v6 = vcombine.high %v1445_v62, %v1445_v62  ;;  %v1864_v5 = vcombine.low %v1445_v62, %v1445_v62 }
 0x4ad   :  { %v1203_v9 = vsel %vm380_vm10, %v1191_v40, %v1202_v34  ;;  %v1274_v10 = vpop.permute.xlu1 %1273 }
 0x4ae   :  { %1211 = vst [vmem:[#allocation3 + $0x18] sm:$0xcc] %v1203_v9  ;;  %v1279_v17 = vrot.slane %v1274_v10, 4  ;;  %v1527_v14 = vsel %vm182_vm3, %v1864_v5, 0 }
 0x4b0   :  { %v1282_v29 = vsel %vm220_vm8, %v1279_v17, %v1280_v38 }
 0x4b1   :  { %v1283_v54 = vsel %vm461_vm12, %v1274_v10, %v1282_v29  ;;  %v1367_v36 = vpop.permute.xlu1 %1366  ;;  %v1935_v41 = vld [vmem:[#allocation3 + $0x8] ss:$24 sps:$4 sm:$0xff]   ;;  %v1937_v42 = vld [vmem:[#allocation3 + $0xc] ss:$24 sps:$4 sm:$0xff]  }
 0x4b2   :  { %1290 = vst [vmem:[#allocation3 + $0x30] sm:$0xcc] %v1283_v54  ;;  %v1372_v43 = vrot.slane %v1367_v36, 4  ;;  %1585 = vmatprep.subr.bf16.mxu0 %v1937_v42 }
 0x4b3   :  { %1586 = vmatpush1.bf16.msra.mxu0 %v1935_v41 }
 0x4b4   :  { %v1375_v44 = vsel %vm220_vm8, %v1372_v43, %v1373_v21 }
 0x4b5   :  { %v1376_v45 = vsel %vm556_vm0, %v1367_v36, %v1375_v44  ;;  %v1197_v46 = vpop.permute.xlu1 %1196  ;;  %v1938_v48 = vld [vmem:[#allocation3] ss:$24 sps:$4 sm:$0xff]   ;;  %v1940_v49 = vld [vmem:[#allocation3 + $0x4] ss:$24 sps:$4 sm:$0xff]  }
 0x4b6   :  { %1383 = vst [vmem:[#allocation3 + $0x48] sm:$0xcc] %v1376_v45  ;;  %v1201_v12 = vrot.slane %v1197_v46, 4  ;;  %1544 = vmatprep.subr.bf16.mxu1 %v1940_v49 }
 0x4b7   :  { %1545 = vmatpush1.bf16.msra.mxu1 %v1938_v48 }
 0x4b8   :  { %v1206_v38 = vsel %vm220_vm8, %v1200_v58, %v1201_v12 }
 0x4b9   :  { %v1207_v57 = vsel %vm380_vm10, %v2671_v47, %v1206_v38  ;;  %v1324_v59 = vpop.permute.xlu1 %1323 }
 0x4ba   :  { %1213 = vst.msk [vmem:[#allocation3 + $0x28] sm:$0xcc] %vm2447_vm1, %v1207_v57  ;;  %v1327_v60 = vrot.slane %v1324_v59, 4 }
 0x4bc   :  { %v1330_v61 = vsel %vm220_vm8, %v1326_v53, %v1327_v60  ;;  %v1332_v16 = vsel %vm508_vm13, %v1324_v59, %v1327_v60 }
 0x4bd   :  { %v1331_v2 = vsel %vm508_vm13, %v2648_v35, %v1330_v61  ;;  %1338 = vst.msk [vmem:[#allocation3 + $0x58] sm:$0x33] %vm2364_vm6, %v1332_v16  ;;  %v1417_v58 = vpop.permute.xlu1 %1416  ;;  %v1941_v47 = vld [vmem:[#allocation3 + $0x30] ss:$24 sps:$4 sm:$0xff]   ;;  %v1943_v4 = vld [vmem:[#allocation3 + $0x34] ss:$24 sps:$4 sm:$0xff]  }
 0x4be   :  { %1337 = vst [vmem:[#allocation3 + $0x50] sm:$0x33] %v1331_v2  ;;  %v1420_v33 = vrot.slane %v1417_v58, 4  ;;  %1546 = vmatprep.subr.bf16.mxu1 %v1943_v4 }
 0x4bf   :  { %1547 = vmatpush1.bf16.msra.mxu1 %v1941_v47 }
 0x4c0   :  { %v1423_v53 = vsel %vm220_vm8, %v1419_v8, %v1420_v33  ;;  %v1425_v13 = vsel %vm603_vm2, %v1417_v58, %v1420_v33  ;;  %1870 = vmatprep.subr.msk.bf16.mxu1 %vm182_vm3, %v1865_v6 }
 0x4c1   :  { %v1424_v35 = vsel %vm603_vm2, %v2680_v63, %v1423_v53  ;;  %1431 = vst.msk [vmem:[#allocation3 + $0x70] sm:$0x33] %vm2364_vm6, %v1425_v13  ;;  %v1948_v15 = vld [vmem:[#allocation3 + $0x14] ss:$24 sps:$4 sm:$0xff]   ;;  %v1946_v19 = vld [vmem:[#allocation3 + $0x10] ss:$24 sps:$4 sm:$0xff]  }
 0x4c2   :  { %1430 = vst [vmem:[#allocation3 + $0x68] sm:$0x33] %v1424_v35 }
 0x4c3   :  { %1549 = vmatpush1.bf16.msra.mxu1 %v1527_v14 }
 0x4c4   :  { %1626 = vmatprep.subr.bf16.mxu1 %v1948_v15  ;;  %v1954_v21 = vld [vmem:[#allocation3 + $0x44] ss:$24 sps:$4 sm:$0xff]   ;;  %v1952_v22 = vld [vmem:[#allocation3 + $0x40] ss:$24 sps:$4 sm:$0xff]  }
 0x4c5   :  { %v1949_v18 = vld [vmem:[#allocation3 + $0x38] ss:$24 sps:$4 sm:$0xff]   ;;  %v1951_v8 = vld [vmem:[#allocation3 + $0x3c] ss:$24 sps:$4 sm:$0xff]  }
 0x4c6   :  { %1871 = vmatmul.mubr.msk.bf16.vlgmr.msra.gmra.mrb[4].mxu1 %vm705_vm5, %v1432_v52  ;;  %1587 = vmatprep.subr.bf16.mxu0 %v1951_v8 }
 0x4c7   :  { %1588 = vmatpush1.bf16.msra.mxu0 %v1949_v18  ;;  %1627 = vmatpush1.bf16.msra.mxu1 %v1946_v19 }
 0x4c8   :  { %v1447_v23 = vld [vmem:[#allocation3 + $0x70] sm:$0x33]  ;;  %1628 = vmatprep.subr.bf16.mxu1 %v1954_v21  ;;  %1658 = vmatprep.mubr.bf16.mxu1 %v2188_v1 }
 0x4c9   :  { %v1446_v63 = vld [vmem:[#allocation3 + $0x68] sm:$0x33]  ;;  %v1869_v25 = vcombine.high %v1447_v23, %v1447_v23  ;;  %v1868_v26 = vcombine.low %v1447_v23, %v1447_v23 }
 0x4ca   :  { %v1867_v20 = vcombine.high %v1446_v63, %v1446_v63  ;;  %v1866_v24 = vcombine.low %v1446_v63, %v1446_v63 }
 0x4cb   :  { %1629 = vmatpush1.bf16.msra.mxu1 %v1952_v22  ;;  %v1539_v27 = vsel %vm182_vm3, %v1868_v26, 0 }
 0x4cc   :  { %1872 = vmatprep.subr.msk.bf16.mxu0 %vm182_vm3, %v1867_v20  ;;  %v1533_v28 = vsel %vm182_vm3, %v1866_v24, 0  ;;  %1874 = vmatprep.subr.msk.bf16.mxu1 %vm182_vm3, %v1869_v25  ;;  %vm1786_vm3 = vcmask 64516  }
 0x4cd   :  { %1590 = vmatpush1.bf16.msra.mxu0 %v1533_v28  ;;  %vm1787_vm4 = vmor %vm1786_vm3, %vm220_vm8 }
 0x4cf   :  { %1631 = vmatpush1.bf16.msra.mxu1 %v1539_v27  ;;  %v1719_v27 = vld [vmem:[#allocation13] sm:$0xf] }
 0x4d0   :  { %1873 = vmatmul.mubr.msk.bf16.vlgmr.msra.gmra.mrb[8].mxu0 %vm705_vm5, %v1432_v52 }
 0x4d2   :  { %1875 = vmatmul.mubr.msk.bf16.vlgmr.msra.gmra.mrb[8].mxu1 %vm705_vm5, %v1432_v52 }
 0x599   :  { %v2749_v1 = vpop.f32.mrb[4].mxu1 }
 0x59a   :  { %v2751_v31 = vpop.f32.mrb[5].mxu1  ;;  %v1667_v37 = vmul.f32 %v2749_v1, %v2521_v55 }
 0x59b   :  { %v1582_v32 = vpop.f32.mrb[6].mxu1  ;;  %v1668_v51 = vmul.f32 %v2751_v31, %v2523_v56 }
 0x59c   :  { %v1583_v30 = vpop.f32.mrb[7].mxu1  ;;  %v1673_v39 = vsel %vm220_vm8, %v1667_v37, 0.0 }
 0x59d   :  { %v1674_v40 = vsel %vm220_vm8, %v1668_v51, 0.0 }
 0x59e   :  { %v1675_v10 = vadd.f32 %v1674_v40, %v1673_v39  ;;  %v1748_v40 = vld [vmem:[#allocation4] sm:$0xff] }
 0x5a3   :  { %v2759_v7 = vpop.f32.mrb[8].mxu0 }
 0x5a4   :  { %v1669_v34 = vmul.f32 %v2759_v7, %v2532_v0  ;;  %v2763_v9 = vpop.f32.mrb[9].mxu0 }
 0x5a5   :  { %v1670_v17 = vmul.f32 %v2763_v9, %v2535_v50  ;;  %v1623_v29 = vpop.f32.mrb[10].mxu0  ;;  %v2768_v41 = vpop.f32.mrb[8].mxu1 }
 0x5a6   :  { %v1676_v54 = vsel %vm220_vm8, %v1669_v34, 0.0  ;;  %v1624_v36 = vpop.f32.mrb[11].mxu0  ;;  %v1671_v44 = vmul.f32 %v2768_v41, %v2537_v3  ;;  %v2773_v45 = vpop.f32.mrb[9].mxu1  ;;  %v1754_v29 = vcombine.high %v1748_v40, %v1748_v40 }
 0x5a7   :  { %v1677_v42 = vadd.f32 %v1676_v54, %v1675_v10  ;;  %v1678_v43 = vsel %vm220_vm8, %v1670_v17, 0.0  ;;  %v1672_v46 = vmul.f32 %v2773_v45, %v2549_v11  ;;  %v1664_v48 = vpop.f32.mrb[10].mxu1 }
 0x5a8   :  { %v1680_v12 = vsel %vm220_vm8, %v1671_v44, 0.0  ;;  %v1665_v38 = vpop.f32.mrb[11].mxu1 }
 0x5a9   :  { %v1679_v49 = vadd.f32 %v1678_v43, %v1677_v42  ;;  %v1682_v59 = vsel %vm897_vm14, %v1672_v46, 0.0 }
 0x5ab   :  { %v1681_v57 = vadd.f32 %v1680_v12, %v1679_v49 }
 0x5ad   :  { %v1683_v60 = vadd.f32 %v1682_v59, %v1681_v57 }
 0x5af   :  { %1684 = vadd.xlane.f32.xlu0 %v1683_v60 }
 0x63c   :  { %v1685_v61 = vpop.xlane.xlu0 %1684 }
 0x63d   :  { %v1686_v16 = vmul.f32 0.001953125, %v1685_v61 }
 0x63f   :  { %v1687_v62 = vmul.f32 %v1686_v16, %v2521_v55  ;;  %v1688_v2 = vmul.f32 %v1686_v16, %v2523_v56  ;;  %v1689_v58 = vmul.f32 %v1686_v16, %v2532_v0  ;;  %v1690_v47 = vmul.f32 %v1686_v16, %v2535_v50 }
 0x640   :  { %v1691_v4 = vmul.f32 %v1686_v16, %v2537_v3  ;;  %v1692_v33 = vmul.f32 %v1686_v16, %v2549_v11 }
 0x641   :  { %v1693_v6 = vsub.f32 %v1667_v37, %v1687_v62  ;;  %v1694_v5 = vsub.f32 %v1668_v51, %v1688_v2  ;;  %v1695_v53 = vsub.f32 %v1669_v34, %v1689_v58  ;;  %v1696_v13 = vsub.f32 %v1670_v17, %v1690_v47  ;;  %v1723_v37 = vld [vmem:[#allocation15] sm:$0xf]  ;;  %v1750_v17 = vld [vmem:[#allocation4 + $0x10] sm:$0xff] }
 0x642   :  { %v1697_v35 = vsub.f32 %v1671_v44, %v1691_v4  ;;  %v1698_v18 = vsub.f32 %v1672_v46, %v1692_v33  ;;  %v1749_v34 = vld [vmem:[#allocation4 + $0x8] sm:$0xff]  ;;  %v1756_v49 = vcombine.high %v1750_v17, %v1750_v17 }
 0x643   :  { %v1699_v14 = vmul.f32 %v1693_v6, %v1693_v6  ;;  %v1700_v15 = vmul.f32 %v1694_v5, %v1694_v5  ;;  %v1701_v52 = vmul.f32 %v1695_v53, %v1695_v53  ;;  %v1702_v55 = vmul.f32 %v1696_v13, %v1696_v13 }
 0x644   :  { %v1703_v50 = vmul.f32 %v1697_v35, %v1697_v35  ;;  %v1704_v11 = vmul.f32 %v1698_v18, %v1698_v18  ;;  %v1755_v54 = vcombine.high %v1749_v34, %v1749_v34 }
 0x645   :  { %v1705_v56 = vsel %vm220_vm8, %v1699_v14, 0.0  ;;  %v1706_v0 = vsel %vm220_vm8, %v1700_v15, 0.0  ;;  %v1708_v3 = vsel %vm220_vm8, %v1701_v52, 0.0  ;;  %v1710_v21 = vsel %vm220_vm8, %v1702_v55, 0.0 }
 0x646   :  { %v1707_v8 = vadd.f32 %v1706_v0, %v1705_v56  ;;  %v1712_v63 = vsel %vm220_vm8, %v1703_v50, 0.0  ;;  %v1714_v20 = vsel %vm897_vm14, %v1704_v11, 0.0 }
 0x648   :  { %v1709_v19 = vadd.f32 %v1708_v3, %v1707_v8 }
 0x64a   :  { %v1711_v23 = vadd.f32 %v1710_v21, %v1709_v19 }
 0x64c   :  { %v1713_v22 = vadd.f32 %v1712_v63, %v1711_v23 }
 0x64e   :  { %v1715_v24 = vadd.f32 %v1714_v20, %v1713_v22 }
 0x650   :  { %1716 = vadd.xlane.f32.xlu1 %v1715_v24 }
 0x6dd   :  { %v1717_v25 = vpop.xlane.xlu1 %1716 }
 0x6de   :  { %v1718_v26 = vmul.f32 0.001953125, %v1717_v25 }
 0x6e0   :  { %v1720_v28 = vadd.f32 1e-05, %v1718_v26 }
 0x6e2   :  { %1964 = vrsqrt.f32 %v1720_v28 }
 0x6ec   :  { %v1965_v32 = vpop.eup %1964 }
 0x6ed   :  { %v1722_v30 = vmul.f32 %v1965_v32, %v1719_v27 }
 0x6ef   :  { %1728 = vperm.xlu0 %1895, %v1722_v30   ;;  %v1724_v51 = vmul.f32 %v1722_v30, %v1686_v16 }
 0x6f1   :  { %v1725_v39 = vsub.f32 %v1723_v37, %v1724_v51 }
 0x6f3   :  { %1739 = vperm.xlu1 %1896, %v1725_v39  }
 0x76e   :  { %v1729_v10 = vpop.permute.xlu0 %1728 }
 0x76f   :  { %v1731_v36 = vmul.f32 %v1729_v10, %v2749_v1  ;;  %v1732_v42 = vmul.f32 %v1729_v10, %v2751_v31  ;;  %v1733_v43 = vmul.f32 %v1729_v10, %v2759_v7  ;;  %v1734_v44 = vmul.f32 %v1729_v10, %v2763_v9 }
 0x770   :  { %v1735_v46 = vmul.f32 %v1729_v10, %v2768_v41  ;;  %v1736_v48 = vmul.f32 %v1729_v10, %v2773_v45 }
 0x772   :  { %v1740_v12 = vpop.permute.xlu1 %1739 }
 0x773   :  { %v1742_v38 = vadd.f32 %v1740_v12, %v1731_v36  ;;  %v1743_v57 = vadd.f32 %v1740_v12, %v1732_v42  ;;  %v1744_v59 = vadd.f32 %v1740_v12, %v1733_v43  ;;  %v1745_v60 = vadd.f32 %v1740_v12, %v1734_v44 }
 0x774   :  { %v1746_v61 = vadd.f32 %v1740_v12, %v1735_v46  ;;  %v1747_v16 = vadd.f32 %v1740_v12, %v1736_v48 }
 0x775   :  { %v1760_v62 = vadd.f32 %v1748_v40, %v1742_v38  ;;  %v1761_v1 = vadd.f32 %v1754_v29, %v1743_v57  ;;  %v1762_v2 = vadd.f32 %v1749_v34, %v1744_v59  ;;  %v1763_v31 = vadd.f32 %v1755_v54, %v1745_v60 }
 0x776   :  { %v1764_v58 = vadd.f32 %v1750_v17, %v1746_v61  ;;  %v1765_v7 = vadd.f32 %v1756_v49, %v1747_v16 }
 0x777   :  { %v1766_v9 = vmax.f32 %v1760_v62, 0.0  ;;  %v1767_v47 = vmax.f32 %v1761_v1, 0.0  ;;  %v1768_v41 = vmax.f32 %v1762_v2, 0.0  ;;  %v1769_v4 = vmax.f32 %v1763_v31, 0.0 }
 0x778   :  { %v1770_v45 = vmax.f32 %v1764_v58, 0.0  ;;  %v1771_v33 = vmax.f32 %v1765_v7, 0.0 }
 0x779   :  { %v1778_v6 = vcombine.low %v1766_v9, %v1767_v47  ;;  %v1779_v5 = vcombine.low %v1768_v41, %v1769_v4 }
 0x77a   :  { %v1780_v53 = vcombine.low %v1770_v45, %v1771_v33 }
 0x77b   :  { %1784 = vst [vmem:[#allocation18] sm:$0xff] %v1778_v6  ;;  %1785 = vst [vmem:[#allocation18 + $0x8] sm:$0xff] %v1779_v5 }
 0x77c   :  { %1788 = vst.msk [vmem:[#allocation18 + $0x10] sm:$0xff] %vm1787_vm4, %v1780_v53 }
 0x77d   :  { %2157 = shalt.err (!%p2154_p12)
}
 0x77e   :  { %s2158_s12 = scalar_lea.hbm %s2818_s8, 384 }
 0x77f   :  { %p2159_p13 = scmp.ne.s32.totalorder %s2818_s8, %s2158_s12  ;;  %p2162_p0 = scmp.lt.u32.totalorder %s2158_s12, %s2818_s8 }
 0x781   :  { %p2164_p1 = pnand %p2162_p0, %p2159_p13 }
 0x783   :  { %2167 = shalt.err (!%p2164_p1)
}
 0x784   :  { %1798 = dma.vmem_to_hbm [thread:$0]  %s1796_s27, 384, %s2818_s8, [#allocation6]  }
 0x785   :  { %2178 = dma.done.wait [#allocation6], 384  }
 0x786   :  { %2179 = vsyncadd [#allocation6], 4294966912 }
 0x787   :  { %1802 = vsyncpa [#allocation5], 1 }
 0x788   :  { %1803 = vsyncpa [#allocation8], 1 }
 0x789   :  { %1804 = vsyncpa [#allocation11], 1 }
 0x78a   :  { %1805 = vsyncpa [#allocation14], 1 }
 0x78b   :  { %1806 = vsyncpa [#allocation17], 1 }
 0x78c   :  { %1807 = vsyncpa [#allocation6], 1 }

</bundles_post_ra>
